<compile_context>
chip_gen: v7x
topology: tpu7x:2x2x1
jax: 0.10.0
libtpu: 0.0.40
codegen_flags: <defaults>
</compile_context>

<pallas_src>
import functools

import jax
import jax.numpy as jnp
from jax import lax
from jax.experimental import pallas as pl
from jax.experimental.pallas import tpu as pltpu

LN_EPS = 1e-5
_GELU_C = 0.7978845608028654  # sqrt(2/pi)


def _round_up(x, m):
    return ((x + m - 1) // m) * m


def _cdiv(a, b):
    return (a + b - 1) // b


def _row_tile(m, itemsize):
    """Row tile: multiple of 8 (16 for sub-32-bit activations so sublane-packed
    vregs stay whole), capped at 512, sized for ~8 grid programs when m is large
    (keeps both v7x TensorCores busy and the pipeline deep)."""
    align = 8 if itemsize >= 4 else 16
    tm = max(align, min(512, _round_up(_cdiv(m, 8), align)))
    return tm, _round_up(m, tm)


def _mlp_tile(mlp_dim):
    """Chunk size along mlp_dim for the fused proj+FFN kernel (bounds w1/w2 chunks
    plus the (tm, tk) hidden so the working set fits v7x's 64 MiB VMEM)."""
    mlp_pad = _round_up(mlp_dim, 128)
    if mlp_pad <= 2048:
        return mlp_pad, mlp_pad
    for tk in (2048, 1536, 1024, 768, 512, 384, 256, 128):
        if mlp_pad % tk == 0:
            return tk, mlp_pad
    return 128, _round_up(mlp_pad, 128)


def _vmem_cap_bytes():
    try:
        cap = int(pltpu.get_tpu_info().vmem_capacity_bytes)
    except Exception:
        cap = 64 * 2**20  # conservative: v7x physical VMEM
    return max(32 * 2**20, cap - 16 * 2**20)


def _compiler_params(semantics, block_bytes, temp_bytes=0):
    # Double-buffered pipeline blocks + in-kernel f32 temporaries, with margin,
    # clamped to the physical VMEM of the current TPU generation.
    est = 2 * block_bytes + temp_bytes
    vmem = int(min(_vmem_cap_bytes(), max(32 * 2**20, 2 * est)))
    return pltpu.CompilerParams(dimension_semantics=semantics,
                                vmem_limit_bytes=vmem)


def _gelu_tanh(x):
    # TODO(synk): PyTorch nn.GELU() defaults to the exact erf formulation; the tanh
    # approximation (max abs err ~1e-3) is used here so the op maps onto the EUP.
    return 0.5 * x * (1.0 + jnp.tanh(_GELU_C * (x + 0.044715 * x * x * x)))


def _layernorm_f32(x, gamma, beta):
    xf = x.astype(jnp.float32)
    mean = jnp.mean(xf, axis=-1, keepdims=True)
    cent = xf - mean
    var = jnp.mean(cent * cent, axis=-1, keepdims=True)
    return cent * lax.rsqrt(var + LN_EPS) * gamma.astype(jnp.float32) + beta.astype(jnp.float32)


# ---------------------------------------------------------------------------
# Kernels
# ---------------------------------------------------------------------------

def _prenorm_qkv_kernel(x_ref, g_ref, b_ref, w_ref, o_ref):
    # x:(tm,D)  g,b:(1,D)  w:(D,3D) [compute dtype]  o:(tm,3D) [compute dtype]
    y = _layernorm_f32(x_ref[...], g_ref[...], b_ref[...])
    o_ref[...] = jnp.dot(y.astype(w_ref.dtype), w_ref[...],
                         preferred_element_type=jnp.float32).astype(o_ref.dtype)


def _attention_kernel(qkv_ref, o_ref, *, heads, scale):
    # qkv:(1, n, 3D) packed in the model's 'b n (qkv h d)' column order.
    # o:(1, n, D) already in 'b n (h d)' layout -> lane-dense store, no XLA transposes.
    n, d3 = qkv_ref.shape[1], qkv_ref.shape[2]
    d = d3 // 3
    dh = d // heads
    cd = qkv_ref.dtype
    qkv = qkv_ref[0]                                       # (n, 3D)
    # Fold the softmax scale into q: O(n*D) multiplies instead of O(heads*n^2).
    qs = (qkv[:, 0:d].astype(jnp.float32) * scale).astype(cd)
    k = qkv[:, d:2 * d]
    v = qkv[:, 2 * d:3 * d]
    # TODO(synk): for long sequences switch to a flash-style online softmax over kv
    # tiles; here each head's full (n, n) score matrix lives in VMEM.
    outs = []
    for h in range(heads):
        sl = slice(h * dh, (h + 1) * dh)
        qh, kh, vh = qs[:, sl], k[:, sl], v[:, sl]
        dots = jnp.einsum("id,jd->ij", qh, kh,
                          preferred_element_type=jnp.float32)          # (n, n)
        mx = jnp.max(dots, axis=-1, keepdims=True)
        p = jnp.exp(dots - mx)
        l = jnp.sum(p, axis=-1, keepdims=True)
        oh = jnp.einsum("ij,jd->id", p.astype(cd), vh,
                        preferred_element_type=jnp.float32)            # (n, dh)
        # Defer normalization to the small (n, dh) output; reciprocal runs on the EUP.
        outs.append(oh * pl.reciprocal(l, approx=True))
    o_ref[0] = jnp.concatenate(outs, axis=-1).astype(o_ref.dtype)


def _proj_ffn_kernel(a_ref, wo_ref, bo_ref, r_ref, g2_ref, bt2_ref,
                     w1_ref, b1_ref, w2_ref, b2_ref, o_ref,
                     x1_sc, z_sc, acc_sc):
    # Fused: out-proj + bias + residual -> LayerNorm -> Linear(D,tk) -> GELU
    #        -> Linear(tk,D) accumulated over mlp chunks -> bias -> residual.
    # a:(tm,D) attention out, r:(tm,D) pre-attention residual, wo:(D,D),
    # w1:(D,tk), w2:(tk,D).  Grid axis 1 (mlp chunks) is a reduction.
    k = pl.program_id(1)

    @pl.when(k == 0)
    def _():
        y = jnp.dot(a_ref[...].astype(wo_ref.dtype), wo_ref[...],
                    preferred_element_type=jnp.float32)
        x1 = y + bo_ref[...].astype(jnp.float32) + r_ref[...].astype(jnp.float32)
        x1_sc[...] = x1
        z_sc[...] = _layernorm_f32(x1, g2_ref[...], bt2_ref[...]).astype(z_sc.dtype)
        acc_sc[...] = jnp.zeros_like(acc_sc)

    h = jnp.dot(z_sc[...], w1_ref[...], preferred_element_type=jnp.float32)
    h = _gelu_tanh(h + b1_ref[...].astype(jnp.float32))
    acc_sc[...] += jnp.dot(h.astype(w2_ref.dtype), w2_ref[...],
                           preferred_element_type=jnp.float32)

    @pl.when(k == pl.num_programs(1) - 1)
    def _():
        o = acc_sc[...] + b2_ref[...].astype(jnp.float32) + x1_sc[...]
        o_ref[...] = o.astype(o_ref.dtype)


# ---------------------------------------------------------------------------
# pallas_call wrappers
# ---------------------------------------------------------------------------

def _prenorm_qkv(xp, gamma, beta, w_qkv, *, tm):
    m_pad, d = xp.shape
    d3 = w_qkv.shape[1]
    x_isz = xp.dtype.itemsize
    c_isz = w_qkv.dtype.itemsize
    block_bytes = tm * d * x_isz + tm * d3 * c_isz + d * d3 * c_isz + 2 * d * x_isz
    temp_bytes = 4 * (2 * tm * d + tm * d3)
    cost = pl.CostEstimate(
        flops=int(2 * m_pad * d * d3 + 10 * m_pad * d),
        transcendentals=int(m_pad),
        bytes_accessed=int(m_pad * d * x_isz + m_pad * d3 * c_isz + d * d3 * c_isz + 2 * d * x_isz))
    return pl.pallas_call(
        _prenorm_qkv_kernel,
        out_shape=jax.ShapeDtypeStruct((m_pad, d3), w_qkv.dtype),
        grid_spec=pltpu.PrefetchScalarGridSpec(
            num_scalar_prefetch=0,
            grid=(m_pad // tm,),
            in_specs=[
                pl.BlockSpec((tm, d), lambda i: (i, 0)),
                pl.BlockSpec((1, d), lambda i: (0, 0)),
                pl.BlockSpec((1, d), lambda i: (0, 0)),
                pl.BlockSpec((d, d3), lambda i: (0, 0)),
            ],
            out_specs=pl.BlockSpec((tm, d3), lambda i: (i, 0)),
        ),
        compiler_params=_compiler_params(("parallel",), block_bytes, temp_bytes),
        cost_estimate=cost,
    )(xp, gamma, beta, w_qkv)


def _attention_core(qkv3, *, heads, scale):
    b, n, d3 = qkv3.shape
    d = d3 // 3
    dh = d // heads
    isz = qkv3.dtype.itemsize
    block_bytes = n * d3 * isz + n * d * isz
    temp_bytes = 4 * (heads * 3 * n * n + 2 * n * d3 + 2 * n * d)
    cost = pl.CostEstimate(
        flops=int(b * heads * (4 * n * n * dh + 8 * n * n)),
        transcendentals=int(b * heads * n * n),
        bytes_accessed=int(b * n * (d3 + d) * isz))
    return pl.pallas_call(
        functools.partial(_attention_kernel, heads=heads, scale=scale),
        out_shape=jax.ShapeDtypeStruct((b, n, d), qkv3.dtype),
        grid_spec=pltpu.PrefetchScalarGridSpec(
            num_scalar_prefetch=0,
            grid=(b,),
            in_specs=[pl.BlockSpec((1, n, d3), lambda i: (i, 0, 0))],
            out_specs=pl.BlockSpec((1, n, d), lambda i: (i, 0, 0)),
        ),
        compiler_params=_compiler_params(("parallel",), block_bytes, temp_bytes),
        cost_estimate=cost,
    )(qkv3)


def _proj_ffn(a2, w_out, b_out, res2, g2, bt2, w1, b1, w2, b2, *, tm, tk):
    m_pad, d = res2.shape
    mlp_pad = w1.shape[1]
    nk = mlp_pad // tk
    a_isz = a2.dtype.itemsize
    x_isz = res2.dtype.itemsize
    c_isz = w1.dtype.itemsize
    block_bytes = (tm * d * (a_isz + 2 * x_isz) + d * d * c_isz
                   + 2 * d * tk * c_isz + (3 * d + tk) * x_isz)
    temp_bytes = 4 * (4 * tm * d + 2 * tm * tk)           # scratch + f32 intermediates
    flops = 2 * m_pad * d * d + 4 * m_pad * d * mlp_pad + 40 * m_pad * (d + mlp_pad)
    cost = pl.CostEstimate(
        flops=int(flops),
        transcendentals=int(m_pad * (mlp_pad + 1)),
        bytes_accessed=int(m_pad * d * (a_isz + 2 * x_isz)
                           + (d * d + 2 * d * mlp_pad) * c_isz))
    return pl.pallas_call(
        _proj_ffn_kernel,
        out_shape=jax.ShapeDtypeStruct((m_pad, d), res2.dtype),
        grid_spec=pltpu.PrefetchScalarGridSpec(
            num_scalar_prefetch=0,
            grid=(m_pad // tm, nk),
            in_specs=[
                pl.BlockSpec((tm, d), lambda i, k: (i, 0)),    # attention output
                pl.BlockSpec((d, d), lambda i, k: (0, 0)),     # w_out
                pl.BlockSpec((1, d), lambda i, k: (0, 0)),     # b_out
                pl.BlockSpec((tm, d), lambda i, k: (i, 0)),    # residual (pre-attn x)
                pl.BlockSpec((1, d), lambda i, k: (0, 0)),     # ln2 gamma
                pl.BlockSpec((1, d), lambda i, k: (0, 0)),     # ln2 beta
                pl.BlockSpec((d, tk), lambda i, k: (0, k)),    # w1 chunk
                pl.BlockSpec((1, tk), lambda i, k: (0, k)),    # b1 chunk
                pl.BlockSpec((tk, d), lambda i, k: (k, 0)),    # w2 chunk
                pl.BlockSpec((1, d), lambda i, k: (0, 0)),     # b2
            ],
            out_specs=pl.BlockSpec((tm, d), lambda i, k: (i, 0)),
            scratch_shapes=[pltpu.VMEM((tm, d), jnp.float32),  # x1 (post-attn residual)
                            pltpu.VMEM((tm, d), w1.dtype),     # LN2 output (compute dtype)
                            pltpu.VMEM((tm, d), jnp.float32)], # FFN accumulator
        ),
        compiler_params=_compiler_params(("parallel", "arbitrary"), block_bytes, temp_bytes),
        cost_estimate=cost,
    )(a2, w_out, b_out, res2, g2, bt2, w1, b1, w2, b2)


# ---------------------------------------------------------------------------
# Transformer forward (Pallas) and pure-JAX reference
# ---------------------------------------------------------------------------

def transformer_forward(params, x, *, heads, mask=None, compute_dtype=None):
    """Pallas forward: per layer Residual(PreNorm(Attention)) then Residual(PreNorm(FF)).

    compute_dtype: dtype fed to the MXU (weights + matmul activations); defaults to
    bfloat16 for float32 inputs. Accumulation, LayerNorm, softmax and residual math
    stay in float32.
    """
    if mask is not None:
        # TODO(synk): optional attention mask path (F.pad + masked_fill) not implemented.
        raise NotImplementedError("mask is not supported by the Pallas kernels")
    b, n, d = x.shape
    assert d % heads == 0, "dim must be divisible by heads"
    cd = compute_dtype
    if cd is None:
        cd = jnp.bfloat16 if x.dtype == jnp.float32 else x.dtype
    cd = jnp.dtype(cd)
    scale = float(d) ** -0.5          # module scales by dim**-0.5 (not head_dim**-0.5)
    m = b * n
    tm, m_pad = _row_tile(m, cd.itemsize)

    x2 = x.reshape(m, d)
    xp = x2 if m_pad == m else jnp.pad(x2, ((0, m_pad - m), (0, 0)))
    for layer in params:
        w_qkv = layer["w_qkv"].astype(cd)
        w_out = layer["w_out"].astype(cd)
        w1 = layer["w1"].astype(cd)
        w2 = layer["w2"].astype(cd)
        b1 = layer["b1"]
        mlp = w1.shape[1]
        tk, mlp_pad = _mlp_tile(mlp)
        if mlp_pad != mlp:
            w1 = jnp.pad(w1, ((0, 0), (0, mlp_pad - mlp)))
            b1 = jnp.pad(b1, ((0, 0), (0, mlp_pad - mlp)))
            w2 = jnp.pad(w2, ((0, mlp_pad - mlp), (0, 0)))

        # --- Residual(PreNorm(Attention)) ---
        qkv = _prenorm_qkv(xp, layer["ln1_g"], layer["ln1_b"], w_qkv, tm=tm)
        if m_pad != m:
            qkv = qkv[:m]
        # qkv columns are already 'b n (qkv h d)' and the attention kernel writes
        # 'b n (h d)' directly, so no XLA transposes are needed around the kernel.
        attn = _attention_core(qkv.reshape(b, n, 3 * d), heads=heads, scale=scale)
        a2 = attn.reshape(m, d)
        if m_pad != m:
            a2 = jnp.pad(a2, ((0, m_pad - m), (0, 0)))
        # --- out-proj + residual fused with Residual(PreNorm(FeedForward)) ---
        xp = _proj_ffn(a2, w_out, layer["b_out"], xp, layer["ln2_g"], layer["ln2_b"],
                       w1, b1, w2, layer["b2"], tm=tm, tk=tk)
    out = xp if m_pad == m else xp[:m]
    return out.reshape(b, n, d)


def init_transformer_params(key, dim, depth, heads, mlp_dim, dtype=jnp.float32):
    del heads  # head count only affects the in-kernel column slicing
    layers = []
    for layer_idx in range(depth):
        ks = jax.random.split(jax.random.fold_in(key, layer_idx), 10)
        layers.append(dict(
            ln1_g=(1.0 + 0.1 * jax.random.normal(ks[0], (1, dim))).astype(dtype),
            ln1_b=(0.05 * jax.random.normal(ks[1], (1, dim))).astype(dtype),
            w_qkv=(jax.random.normal(ks[2], (dim, 3 * dim)) / jnp.sqrt(dim)).astype(dtype),
            w_out=(jax.random.normal(ks[3], (dim, dim)) / jnp.sqrt(dim)).astype(dtype),
            b_out=(0.02 * jax.random.normal(ks[4], (1, dim))).astype(dtype),
            ln2_g=(1.0 + 0.1 * jax.random.normal(ks[5], (1, dim))).astype(dtype),
            ln2_b=(0.05 * jax.random.normal(ks[6], (1, dim))).astype(dtype),
            w1=(jax.random.normal(ks[7], (dim, mlp_dim)) / jnp.sqrt(dim)).astype(dtype),
            b1=(0.02 * jax.random.normal(ks[8], (1, mlp_dim))).astype(dtype),
            w2=(jax.random.normal(ks[9], (mlp_dim, dim)) / jnp.sqrt(mlp_dim)).astype(dtype),
            b2=jnp.zeros((1, dim), dtype),
        ))
    return layers


def transformer_reference(params, x, *, heads, compute_dtype=None):
    """Pure-JAX reference mirroring the PyTorch module (tanh-GELU variant).

    Matmul operands are cast to compute_dtype with f32 accumulation so the reference
    uses the same numerical recipe as the Pallas kernels."""
    b, n, d = x.shape
    dh = d // heads
    scale = float(d) ** -0.5
    cd = compute_dtype
    if cd is None:
        cd = jnp.bfloat16 if x.dtype == jnp.float32 else x.dtype
    cd = jnp.dtype(cd)

    def mm(a, w):
        return jnp.dot(a.astype(cd), w.astype(cd), preferred_element_type=jnp.float32)

    def layernorm(v, g, bb):
        mean = jnp.mean(v, axis=-1, keepdims=True)
        cent = v - mean
        var = jnp.mean(cent * cent, axis=-1, keepdims=True)
        return cent / jnp.sqrt(var + LN_EPS) * g + bb

    for layer in params:
        y = layernorm(x, layer["ln1_g"], layer["ln1_b"])
        qkv = mm(y, layer["w_qkv"]).astype(cd)
        qkv = qkv.reshape(b, n, 3, heads, dh).transpose(2, 0, 3, 1, 4)
        q, k, v = qkv[0], qkv[1], qkv[2]
        dots = jnp.einsum("bhid,bhjd->bhij", q, k,
                          preferred_element_type=jnp.float32) * scale
        attn = jax.nn.softmax(dots, axis=-1)
        out = jnp.einsum("bhij,bhjd->bhid", attn.astype(cd), v,
                         preferred_element_type=jnp.float32)
        out = out.transpose(0, 2, 1, 3).reshape(b, n, d).astype(cd)
        x = mm(out, layer["w_out"]) + layer["b_out"] + x
        y2 = layernorm(x, layer["ln2_g"], layer["ln2_b"])
        h1 = _gelu_tanh(mm(y2, layer["w1"]) + layer["b1"])
        x = mm(h1, layer["w2"]) + layer["b2"] + x
    return x


if __name__ == "__main__":
    B, N, DIM, HEADS, MLP_DIM, DEPTH = 2, 8, 128, 8, 256, 2
    key = jax.random.PRNGKey(0)
    kx, kp = jax.random.split(key)
    x = jax.random.normal(kx, (B, N, DIM), dtype=jnp.float32)
    params = init_transformer_params(kp, DIM, DEPTH, HEADS, MLP_DIM)

    fwd = jax.jit(functools.partial(transformer_forward, heads=HEADS))
    out = jax.block_until_ready(fwd(params, x))

    ref = transformer_reference(params, x, heads=HEADS)
    assert out.shape == (B, N, DIM)
    # Tolerance covers MXU-vs-XLA accumulation order, the approx reciprocal in the
    # softmax epilogue, and minor rounding-order differences (both sides feed the
    # matmuls bf16 operands with f32 accumulation).
    max_err = float(jnp.max(jnp.abs(out - ref)))
    assert jnp.allclose(out, ref, atol=3e-2, rtol=3e-2), f"max abs err {max_err}"
    print("KERNEL_OK")
</pallas_src>

<mosaic_0001>
module attributes {stable_mosaic.version = 11 : i64} {
  func.func @_attention_kernel(%arg0: i32, %arg1: memref<1x8x384xbf16, #tpu.memory_space<vmem>>, %arg2: memref<1x8x128xbf16, #tpu.memory_space<vmem>>) attributes {dimension_semantics = [#tpu.dimension_semantics<parallel>], iteration_bounds = array<i64: 2>, scalar_prefetch = 0 : i64, scratch_operands = 0 : i64, tpu.core_type = #tpu.core_type<tc>, window_params = [{transform_indices = @transform_0, window_bounds = array<i64: 1, 8, 384>}, {transform_indices = @transform_1, window_bounds = array<i64: 1, 8, 128>}]} {
    %c0 = arith.constant 0 : index
    %c0_0 = arith.constant 0 : index
    %c0_1 = arith.constant 0 : index
    %0 = vector.load %arg1[%c0, %c0_0, %c0_1] : memref<1x8x384xbf16, #tpu.memory_space<vmem>>, vector<1x8x384xbf16>
    %1 = vector.shape_cast %0 : vector<1x8x384xbf16> to vector<8x384xbf16>
    %2 = vector.extract_strided_slice %1 {offsets = [0, 0], sizes = [8, 128], strides = [1, 1]} : vector<8x384xbf16> to vector<8x128xbf16>
    %3 = arith.extf %2 : vector<8x128xbf16> to vector<8x128xf32>
    %cst = arith.constant 0.0883883461 : f32
    %4 = vector.broadcast %cst : f32 to vector<8x128xf32>
    %5 = arith.mulf %3, %4 : vector<8x128xf32>
    %6 = arith.truncf %5 : vector<8x128xf32> to vector<8x128xbf16>
    %7 = vector.extract_strided_slice %1 {offsets = [0, 128], sizes = [8, 128], strides = [1, 1]} : vector<8x384xbf16> to vector<8x128xbf16>
    %8 = vector.extract_strided_slice %1 {offsets = [0, 256], sizes = [8, 128], strides = [1, 1]} : vector<8x384xbf16> to vector<8x128xbf16>
    %9 = vector.extract_strided_slice %6 {offsets = [0, 0], sizes = [8, 16], strides = [1, 1]} : vector<8x128xbf16> to vector<8x16xbf16>
    %10 = vector.extract_strided_slice %7 {offsets = [0, 0], sizes = [8, 16], strides = [1, 1]} : vector<8x128xbf16> to vector<8x16xbf16>
    %11 = vector.extract_strided_slice %8 {offsets = [0, 0], sizes = [8, 16], strides = [1, 1]} : vector<8x128xbf16> to vector<8x16xbf16>
    "tpu.trace_start"() <{level = 10 : i32, message = "id,jd->ij"}> : () -> ()
    %cst_2 = arith.constant dense<0.000000e+00> : vector<8x8xf32>
    %12 = tpu.matmul %9, %10, %cst_2 {dimension_numbers = #tpu.dot_dimension_numbers<[1], [1], [0], [0], [0, 0, 1, 0], [], []>} : vector<8x16xbf16>, vector<8x16xbf16>, vector<8x8xf32> -> vector<8x8xf32>
    "tpu.trace_stop"() : () -> ()
    %cst_3 = arith.constant dense<0xFF800000> : vector<8xf32>
    %13 = vector.multi_reduction <maximumf>, %12, %cst_3 [1] : vector<8x8xf32> to vector<8xf32>
    %14 = vector.shape_cast %13 : vector<8xf32> to vector<8x1xf32>
    %15 = vector.broadcast %14 : vector<8x1xf32> to vector<8x8xf32>
    %16 = arith.subf %12, %15 : vector<8x8xf32>
    %17 = math.exp %16 : vector<8x8xf32>
    %cst_4 = arith.constant dense<0.000000e+00> : vector<8xf32>
    %18 = vector.multi_reduction <add>, %17, %cst_4 [1] : vector<8x8xf32> to vector<8xf32>
    %19 = vector.shape_cast %18 : vector<8xf32> to vector<8x1xf32>
    %20 = arith.truncf %17 : vector<8x8xf32> to vector<8x8xbf16>
    "tpu.trace_start"() <{level = 10 : i32, message = "ij,jd->id"}> : () -> ()
    %cst_5 = arith.constant dense<0.000000e+00> : vector<8x16xf32>
    %21 = tpu.matmul %20, %11, %cst_5 {dimension_numbers = #tpu.dot_dimension_numbers<[1], [0], [0], [1], [0, 0, 1, 1], [], []>} : vector<8x8xbf16>, vector<8x16xbf16>, vector<8x16xf32> -> vector<8x16xf32>
    "tpu.trace_stop"() : () -> ()
    %22 = tpu.reciprocal %19 {approx = true} : vector<8x1xf32> -> vector<8x1xf32>
    %23 = vector.broadcast %22 : vector<8x1xf32> to vector<8x16xf32>
    %24 = arith.mulf %21, %23 : vector<8x16xf32>
    %25 = vector.extract_strided_slice %6 {offsets = [0, 16], sizes = [8, 16], strides = [1, 1]} : vector<8x128xbf16> to vector<8x16xbf16>
    %26 = vector.extract_strided_slice %7 {offsets = [0, 16], sizes = [8, 16], strides = [1, 1]} : vector<8x128xbf16> to vector<8x16xbf16>
    %27 = vector.extract_strided_slice %8 {offsets = [0, 16], sizes = [8, 16], strides = [1, 1]} : vector<8x128xbf16> to vector<8x16xbf16>
    "tpu.trace_start"() <{level = 10 : i32, message = "id,jd->ij"}> : () -> ()
    %cst_6 = arith.constant dense<0.000000e+00> : vector<8x8xf32>
    %28 = tpu.matmul %25, %26, %cst_6 {dimension_numbers = #tpu.dot_dimension_numbers<[1], [1], [0], [0], [0, 0, 1, 0], [], []>} : vector<8x16xbf16>, vector<8x16xbf16>, vector<8x8xf32> -> vector<8x8xf32>
    "tpu.trace_stop"() : () -> ()
    %cst_7 = arith.constant dense<0xFF800000> : vector<8xf32>
    %29 = vector.multi_reduction <maximumf>, %28, %cst_7 [1] : vector<8x8xf32> to vector<8xf32>
    %30 = vector.shape_cast %29 : vector<8xf32> to vector<8x1xf32>
    %31 = vector.broadcast %30 : vector<8x1xf32> to vector<8x8xf32>
    %32 = arith.subf %28, %31 : vector<8x8xf32>
    %33 = math.exp %32 : vector<8x8xf32>
    %cst_8 = arith.constant dense<0.000000e+00> : vector<8xf32>
    %34 = vector.multi_reduction <add>, %33, %cst_8 [1] : vector<8x8xf32> to vector<8xf32>
    %35 = vector.shape_cast %34 : vector<8xf32> to vector<8x1xf32>
    %36 = arith.truncf %33 : vector<8x8xf32> to vector<8x8xbf16>
    "tpu.trace_start"() <{level = 10 : i32, message = "ij,jd->id"}> : () -> ()
    %cst_9 = arith.constant dense<0.000000e+00> : vector<8x16xf32>
    %37 = tpu.matmul %36, %27, %cst_9 {dimension_numbers = #tpu.dot_dimension_numbers<[1], [0], [0], [1], [0, 0, 1, 1], [], []>} : vector<8x8xbf16>, vector<8x16xbf16>, vector<8x16xf32> -> vector<8x16xf32>
    "tpu.trace_stop"() : () -> ()
    %38 = tpu.reciprocal %35 {approx = true} : vector<8x1xf32> -> vector<8x1xf32>
    %39 = vector.broadcast %38 : vector<8x1xf32> to vector<8x16xf32>
    %40 = arith.mulf %37, %39 : vector<8x16xf32>
    %41 = vector.extract_strided_slice %6 {offsets = [0, 32], sizes = [8, 16], strides = [1, 1]} : vector<8x128xbf16> to vector<8x16xbf16>
    %42 = vector.extract_strided_slice %7 {offsets = [0, 32], sizes = [8, 16], strides = [1, 1]} : vector<8x128xbf16> to vector<8x16xbf16>
    %43 = vector.extract_strided_slice %8 {offsets = [0, 32], sizes = [8, 16], strides = [1, 1]} : vector<8x128xbf16> to vector<8x16xbf16>
    "tpu.trace_start"() <{level = 10 : i32, message = "id,jd->ij"}> : () -> ()
    %cst_10 = arith.constant dense<0.000000e+00> : vector<8x8xf32>
    %44 = tpu.matmul %41, %42, %cst_10 {dimension_numbers = #tpu.dot_dimension_numbers<[1], [1], [0], [0], [0, 0, 1, 0], [], []>} : vector<8x16xbf16>, vector<8x16xbf16>, vector<8x8xf32> -> vector<8x8xf32>
    "tpu.trace_stop"() : () -> ()
    %cst_11 = arith.constant dense<0xFF800000> : vector<8xf32>
    %45 = vector.multi_reduction <maximumf>, %44, %cst_11 [1] : vector<8x8xf32> to vector<8xf32>
    %46 = vector.shape_cast %45 : vector<8xf32> to vector<8x1xf32>
    %47 = vector.broadcast %46 : vector<8x1xf32> to vector<8x8xf32>
    %48 = arith.subf %44, %47 : vector<8x8xf32>
    %49 = math.exp %48 : vector<8x8xf32>
    %cst_12 = arith.constant dense<0.000000e+00> : vector<8xf32>
    %50 = vector.multi_reduction <add>, %49, %cst_12 [1] : vector<8x8xf32> to vector<8xf32>
    %51 = vector.shape_cast %50 : vector<8xf32> to vector<8x1xf32>
    %52 = arith.truncf %49 : vector<8x8xf32> to vector<8x8xbf16>
    "tpu.trace_start"() <{level = 10 : i32, message = "ij,jd->id"}> : () -> ()
    %cst_13 = arith.constant dense<0.000000e+00> : vector<8x16xf32>
    %53 = tpu.matmul %52, %43, %cst_13 {dimension_numbers = #tpu.dot_dimension_numbers<[1], [0], [0], [1], [0, 0, 1, 1], [], []>} : vector<8x8xbf16>, vector<8x16xbf16>, vector<8x16xf32> -> vector<8x16xf32>
    "tpu.trace_stop"() : () -> ()
    %54 = tpu.reciprocal %51 {approx = true} : vector<8x1xf32> -> vector<8x1xf32>
    %55 = vector.broadcast %54 : vector<8x1xf32> to vector<8x16xf32>
    %56 = arith.mulf %53, %55 : vector<8x16xf32>
    %57 = vector.extract_strided_slice %6 {offsets = [0, 48], sizes = [8, 16], strides = [1, 1]} : vector<8x128xbf16> to vector<8x16xbf16>
    %58 = vector.extract_strided_slice %7 {offsets = [0, 48], sizes = [8, 16], strides = [1, 1]} : vector<8x128xbf16> to vector<8x16xbf16>
    %59 = vector.extract_strided_slice %8 {offsets = [0, 48], sizes = [8, 16], strides = [1, 1]} : vector<8x128xbf16> to vector<8x16xbf16>
    "tpu.trace_start"() <{level = 10 : i32, message = "id,jd->ij"}> : () -> ()
    %cst_14 = arith.constant dense<0.000000e+00> : vector<8x8xf32>
    %60 = tpu.matmul %57, %58, %cst_14 {dimension_numbers = #tpu.dot_dimension_numbers<[1], [1], [0], [0], [0, 0, 1, 0], [], []>} : vector<8x16xbf16>, vector<8x16xbf16>, vector<8x8xf32> -> vector<8x8xf32>
    "tpu.trace_stop"() : () -> ()
    %cst_15 = arith.constant dense<0xFF800000> : vector<8xf32>
    %61 = vector.multi_reduction <maximumf>, %60, %cst_15 [1] : vector<8x8xf32> to vector<8xf32>
    %62 = vector.shape_cast %61 : vector<8xf32> to vector<8x1xf32>
    %63 = vector.broadcast %62 : vector<8x1xf32> to vector<8x8xf32>
    %64 = arith.subf %60, %63 : vector<8x8xf32>
    %65 = math.exp %64 : vector<8x8xf32>
    %cst_16 = arith.constant dense<0.000000e+00> : vector<8xf32>
    %66 = vector.multi_reduction <add>, %65, %cst_16 [1] : vector<8x8xf32> to vector<8xf32>
    %67 = vector.shape_cast %66 : vector<8xf32> to vector<8x1xf32>
    %68 = arith.truncf %65 : vector<8x8xf32> to vector<8x8xbf16>
    "tpu.trace_start"() <{level = 10 : i32, message = "ij,jd->id"}> : () -> ()
    %cst_17 = arith.constant dense<0.000000e+00> : vector<8x16xf32>
    %69 = tpu.matmul %68, %59, %cst_17 {dimension_numbers = #tpu.dot_dimension_numbers<[1], [0], [0], [1], [0, 0, 1, 1], [], []>} : vector<8x8xbf16>, vector<8x16xbf16>, vector<8x16xf32> -> vector<8x16xf32>
    "tpu.trace_stop"() : () -> ()
    %70 = tpu.reciprocal %67 {approx = true} : vector<8x1xf32> -> vector<8x1xf32>
    %71 = vector.broadcast %70 : vector<8x1xf32> to vector<8x16xf32>
    %72 = arith.mulf %69, %71 : vector<8x16xf32>
    %73 = vector.extract_strided_slice %6 {offsets = [0, 64], sizes = [8, 16], strides = [1, 1]} : vector<8x128xbf16> to vector<8x16xbf16>
    %74 = vector.extract_strided_slice %7 {offsets = [0, 64], sizes = [8, 16], strides = [1, 1]} : vector<8x128xbf16> to vector<8x16xbf16>
    %75 = vector.extract_strided_slice %8 {offsets = [0, 64], sizes = [8, 16], strides = [1, 1]} : vector<8x128xbf16> to vector<8x16xbf16>
    "tpu.trace_start"() <{level = 10 : i32, message = "id,jd->ij"}> : () -> ()
    %cst_18 = arith.constant dense<0.000000e+00> : vector<8x8xf32>
    %76 = tpu.matmul %73, %74, %cst_18 {dimension_numbers = #tpu.dot_dimension_numbers<[1], [1], [0], [0], [0, 0, 1, 0], [], []>} : vector<8x16xbf16>, vector<8x16xbf16>, vector<8x8xf32> -> vector<8x8xf32>
    "tpu.trace_stop"() : () -> ()
    %cst_19 = arith.constant dense<0xFF800000> : vector<8xf32>
    %77 = vector.multi_reduction <maximumf>, %76, %cst_19 [1] : vector<8x8xf32> to vector<8xf32>
    %78 = vector.shape_cast %77 : vector<8xf32> to vector<8x1xf32>
    %79 = vector.broadcast %78 : vector<8x1xf32> to vector<8x8xf32>
    %80 = arith.subf %76, %79 : vector<8x8xf32>
    %81 = math.exp %80 : vector<8x8xf32>
    %cst_20 = arith.constant dense<0.000000e+00> : vector<8xf32>
    %82 = vector.multi_reduction <add>, %81, %cst_20 [1] : vector<8x8xf32> to vector<8xf32>
    %83 = vector.shape_cast %82 : vector<8xf32> to vector<8x1xf32>
    %84 = arith.truncf %81 : vector<8x8xf32> to vector<8x8xbf16>
    "tpu.trace_start"() <{level = 10 : i32, message = "ij,jd->id"}> : () -> ()
    %cst_21 = arith.constant dense<0.000000e+00> : vector<8x16xf32>
    %85 = tpu.matmul %84, %75, %cst_21 {dimension_numbers = #tpu.dot_dimension_numbers<[1], [0], [0], [1], [0, 0, 1, 1], [], []>} : vector<8x8xbf16>, vector<8x16xbf16>, vector<8x16xf32> -> vector<8x16xf32>
    "tpu.trace_stop"() : () -> ()
    %86 = tpu.reciprocal %83 {approx = true} : vector<8x1xf32> -> vector<8x1xf32>
    %87 = vector.broadcast %86 : vector<8x1xf32> to vector<8x16xf32>
    %88 = arith.mulf %85, %87 : vector<8x16xf32>
    %89 = vector.extract_strided_slice %6 {offsets = [0, 80], sizes = [8, 16], strides = [1, 1]} : vector<8x128xbf16> to vector<8x16xbf16>
    %90 = vector.extract_strided_slice %7 {offsets = [0, 80], sizes = [8, 16], strides = [1, 1]} : vector<8x128xbf16> to vector<8x16xbf16>
    %91 = vector.extract_strided_slice %8 {offsets = [0, 80], sizes = [8, 16], strides = [1, 1]} : vector<8x128xbf16> to vector<8x16xbf16>
    "tpu.trace_start"() <{level = 10 : i32, message = "id,jd->ij"}> : () -> ()
    %cst_22 = arith.constant dense<0.000000e+00> : vector<8x8xf32>
    %92 = tpu.matmul %89, %90, %cst_22 {dimension_numbers = #tpu.dot_dimension_numbers<[1], [1], [0], [0], [0, 0, 1, 0], [], []>} : vector<8x16xbf16>, vector<8x16xbf16>, vector<8x8xf32> -> vector<8x8xf32>
    "tpu.trace_stop"() : () -> ()
    %cst_23 = arith.constant dense<0xFF800000> : vector<8xf32>
    %93 = vector.multi_reduction <maximumf>, %92, %cst_23 [1] : vector<8x8xf32> to vector<8xf32>
    %94 = vector.shape_cast %93 : vector<8xf32> to vector<8x1xf32>
    %95 = vector.broadcast %94 : vector<8x1xf32> to vector<8x8xf32>
    %96 = arith.subf %92, %95 : vector<8x8xf32>
    %97 = math.exp %96 : vector<8x8xf32>
    %cst_24 = arith.constant dense<0.000000e+00> : vector<8xf32>
    %98 = vector.multi_reduction <add>, %97, %cst_24 [1] : vector<8x8xf32> to vector<8xf32>
    %99 = vector.shape_cast %98 : vector<8xf32> to vector<8x1xf32>
    %100 = arith.truncf %97 : vector<8x8xf32> to vector<8x8xbf16>
    "tpu.trace_start"() <{level = 10 : i32, message = "ij,jd->id"}> : () -> ()
    %cst_25 = arith.constant dense<0.000000e+00> : vector<8x16xf32>
    %101 = tpu.matmul %100, %91, %cst_25 {dimension_numbers = #tpu.dot_dimension_numbers<[1], [0], [0], [1], [0, 0, 1, 1], [], []>} : vector<8x8xbf16>, vector<8x16xbf16>, vector<8x16xf32> -> vector<8x16xf32>
    "tpu.trace_stop"() : () -> ()
    %102 = tpu.reciprocal %99 {approx = true} : vector<8x1xf32> -> vector<8x1xf32>
    %103 = vector.broadcast %102 : vector<8x1xf32> to vector<8x16xf32>
    %104 = arith.mulf %101, %103 : vector<8x16xf32>
    %105 = vector.extract_strided_slice %6 {offsets = [0, 96], sizes = [8, 16], strides = [1, 1]} : vector<8x128xbf16> to vector<8x16xbf16>
    %106 = vector.extract_strided_slice %7 {offsets = [0, 96], sizes = [8, 16], strides = [1, 1]} : vector<8x128xbf16> to vector<8x16xbf16>
    %107 = vector.extract_strided_slice %8 {offsets = [0, 96], sizes = [8, 16], strides = [1, 1]} : vector<8x128xbf16> to vector<8x16xbf16>
    "tpu.trace_start"() <{level = 10 : i32, message = "id,jd->ij"}> : () -> ()
    %cst_26 = arith.constant dense<0.000000e+00> : vector<8x8xf32>
    %108 = tpu.matmul %105, %106, %cst_26 {dimension_numbers = #tpu.dot_dimension_numbers<[1], [1], [0], [0], [0, 0, 1, 0], [], []>} : vector<8x16xbf16>, vector<8x16xbf16>, vector<8x8xf32> -> vector<8x8xf32>
    "tpu.trace_stop"() : () -> ()
    %cst_27 = arith.constant dense<0xFF800000> : vector<8xf32>
    %109 = vector.multi_reduction <maximumf>, %108, %cst_27 [1] : vector<8x8xf32> to vector<8xf32>
    %110 = vector.shape_cast %109 : vector<8xf32> to vector<8x1xf32>
    %111 = vector.broadcast %110 : vector<8x1xf32> to vector<8x8xf32>
    %112 = arith.subf %108, %111 : vector<8x8xf32>
    %113 = math.exp %112 : vector<8x8xf32>
    %cst_28 = arith.constant dense<0.000000e+00> : vector<8xf32>
    %114 = vector.multi_reduction <add>, %113, %cst_28 [1] : vector<8x8xf32> to vector<8xf32>
    %115 = vector.shape_cast %114 : vector<8xf32> to vector<8x1xf32>
    %116 = arith.truncf %113 : vector<8x8xf32> to vector<8x8xbf16>
    "tpu.trace_start"() <{level = 10 : i32, message = "ij,jd->id"}> : () -> ()
    %cst_29 = arith.constant dense<0.000000e+00> : vector<8x16xf32>
    %117 = tpu.matmul %116, %107, %cst_29 {dimension_numbers = #tpu.dot_dimension_numbers<[1], [0], [0], [1], [0, 0, 1, 1], [], []>} : vector<8x8xbf16>, vector<8x16xbf16>, vector<8x16xf32> -> vector<8x16xf32>
    "tpu.trace_stop"() : () -> ()
    %118 = tpu.reciprocal %115 {approx = true} : vector<8x1xf32> -> vector<8x1xf32>
    %119 = vector.broadcast %118 : vector<8x1xf32> to vector<8x16xf32>
    %120 = arith.mulf %117, %119 : vector<8x16xf32>
    %121 = vector.extract_strided_slice %6 {offsets = [0, 112], sizes = [8, 16], strides = [1, 1]} : vector<8x128xbf16> to vector<8x16xbf16>
    %122 = vector.extract_strided_slice %7 {offsets = [0, 112], sizes = [8, 16], strides = [1, 1]} : vector<8x128xbf16> to vector<8x16xbf16>
    %123 = vector.extract_strided_slice %8 {offsets = [0, 112], sizes = [8, 16], strides = [1, 1]} : vector<8x128xbf16> to vector<8x16xbf16>
    "tpu.trace_start"() <{level = 10 : i32, message = "id,jd->ij"}> : () -> ()
    %cst_30 = arith.constant dense<0.000000e+00> : vector<8x8xf32>
    %124 = tpu.matmul %121, %122, %cst_30 {dimension_numbers = #tpu.dot_dimension_numbers<[1], [1], [0], [0], [0, 0, 1, 0], [], []>} : vector<8x16xbf16>, vector<8x16xbf16>, vector<8x8xf32> -> vector<8x8xf32>
    "tpu.trace_stop"() : () -> ()
    %cst_31 = arith.constant dense<0xFF800000> : vector<8xf32>
    %125 = vector.multi_reduction <maximumf>, %124, %cst_31 [1] : vector<8x8xf32> to vector<8xf32>
    %126 = vector.shape_cast %125 : vector<8xf32> to vector<8x1xf32>
    %127 = vector.broadcast %126 : vector<8x1xf32> to vector<8x8xf32>
    %128 = arith.subf %124, %127 : vector<8x8xf32>
    %129 = math.exp %128 : vector<8x8xf32>
    %cst_32 = arith.constant dense<0.000000e+00> : vector<8xf32>
    %130 = vector.multi_reduction <add>, %129, %cst_32 [1] : vector<8x8xf32> to vector<8xf32>
    %131 = vector.shape_cast %130 : vector<8xf32> to vector<8x1xf32>
    %132 = arith.truncf %129 : vector<8x8xf32> to vector<8x8xbf16>
    "tpu.trace_start"() <{level = 10 : i32, message = "ij,jd->id"}> : () -> ()
    %cst_33 = arith.constant dense<0.000000e+00> : vector<8x16xf32>
    %133 = tpu.matmul %132, %123, %cst_33 {dimension_numbers = #tpu.dot_dimension_numbers<[1], [0], [0], [1], [0, 0, 1, 1], [], []>} : vector<8x8xbf16>, vector<8x16xbf16>, vector<8x16xf32> -> vector<8x16xf32>
    "tpu.trace_stop"() : () -> ()
    %134 = tpu.reciprocal %131 {approx = true} : vector<8x1xf32> -> vector<8x1xf32>
    %135 = vector.broadcast %134 : vector<8x1xf32> to vector<8x16xf32>
    %136 = arith.mulf %133, %135 : vector<8x16xf32>
    %137 = tpu.concatenate %24, %40, %56, %72, %88, %104, %120, %136 in 1 : vector<8x16xf32>, vector<8x16xf32>, vector<8x16xf32>, vector<8x16xf32>, vector<8x16xf32>, vector<8x16xf32>, vector<8x16xf32>, vector<8x16xf32> -> vector<8x128xf32>
    %138 = arith.truncf %137 : vector<8x128xf32> to vector<8x128xbf16>
    %c0_34 = arith.constant 0 : index
    %c0_35 = arith.constant 0 : index
    %c0_36 = arith.constant 0 : index
    %139 = vector.load %arg2[%c0_34, %c0_35, %c0_36] : memref<1x8x128xbf16, #tpu.memory_space<vmem>>, vector<1x8x128xbf16>
    %140 = vector.shape_cast %139 : vector<1x8x128xbf16> to vector<8x128xbf16>
    %141 = vector.shape_cast %138 : vector<8x128xbf16> to vector<1x8x128xbf16>
    tpu.vector_store %arg2[%c0_34, %c0_35, %c0_36], %141 {strides = array<i32>} : memref<1x8x128xbf16, #tpu.memory_space<vmem>>, vector<1x8x128xbf16>,
    return
  }
  func.func @transform_0(%arg0: i32) -> (i32, i32, i32) {
    %c0_i32 = arith.constant 0 : i32
    %c0_i32_0 = arith.constant 0 : i32
    %c0_i32_1 = arith.constant 0 : i32
    return %arg0, %c0_i32, %c0_i32_0 : i32, i32, i32
  }
  func.func @transform_1(%arg0: i32) -> (i32, i32, i32) {
    %c0_i32 = arith.constant 0 : i32
    %c0_i32_0 = arith.constant 0 : i32
    %c0_i32_1 = arith.constant 0 : i32
    return %arg0, %c0_i32, %c0_i32_0 : i32, i32, i32
  }
}

module attributes {stable_mosaic.version = 11 : i64} {
  func.func @_prenorm_qkv_kernel(%arg0: i32, %arg1: memref<16x128xf32, #tpu.memory_space<vmem>>, %arg2: memref<1x128xf32, #tpu.memory_space<vmem>>, %arg3: memref<1x128xf32, #tpu.memory_space<vmem>>, %arg4: memref<128x384xbf16, #tpu.memory_space<vmem>>, %arg5: memref<16x384xbf16, #tpu.memory_space<vmem>>) attributes {dimension_semantics = [#tpu.dimension_semantics<parallel>], iteration_bounds = array<i64: 1>, scalar_prefetch = 0 : i64, scratch_operands = 0 : i64, tpu.core_type = #tpu.core_type<tc>, window_params = [{transform_indices = @transform_0, window_bounds = array<i64: 16, 128>}, {pipeline_mode = #tpu.pipeline_mode<synchronous>, transform_indices = @transform_1, window_bounds = array<i64: 1, 128>}, {pipeline_mode = #tpu.pipeline_mode<synchronous>, transform_indices = @transform_2, window_bounds = array<i64: 1, 128>}, {pipeline_mode = #tpu.pipeline_mode<synchronous>, transform_indices = @transform_3, window_bounds = array<i64: 128, 384>}, {transform_indices = @transform_4, window_bounds = array<i64: 16, 384>}]} {
    %c0 = arith.constant 0 : index
    %c0_0 = arith.constant 0 : index
    %0 = vector.load %arg1[%c0, %c0_0] : memref<16x128xf32, #tpu.memory_space<vmem>>, vector<16x128xf32>
    %c0_1 = arith.constant 0 : index
    %c0_2 = arith.constant 0 : index
    %1 = vector.load %arg2[%c0_1, %c0_2] : memref<1x128xf32, #tpu.memory_space<vmem>>, vector<1x128xf32>
    %c0_3 = arith.constant 0 : index
    %c0_4 = arith.constant 0 : index
    %2 = vector.load %arg3[%c0_3, %c0_4] : memref<1x128xf32, #tpu.memory_space<vmem>>, vector<1x128xf32>
    %cst = arith.constant dense<0.000000e+00> : vector<16xf32>
    %3 = vector.multi_reduction <add>, %0, %cst [1] : vector<16x128xf32> to vector<16xf32>
    %4 = vector.shape_cast %3 : vector<16xf32> to vector<16x1xf32>
    %cst_5 = arith.constant 1.280000e+02 : f32
    %5 = vector.broadcast %cst_5 : f32 to vector<16x1xf32>
    %6 = arith.divf %4, %5 : vector<16x1xf32>
    %7 = vector.broadcast %6 : vector<16x1xf32> to vector<16x128xf32>
    %8 = arith.subf %0, %7 : vector<16x128xf32>
    %9 = arith.mulf %8, %8 : vector<16x128xf32>
    %cst_6 = arith.constant dense<0.000000e+00> : vector<16xf32>
    %10 = vector.multi_reduction <add>, %9, %cst_6 [1] : vector<16x128xf32> to vector<16xf32>
    %11 = vector.shape_cast %10 : vector<16xf32> to vector<16x1xf32>
    %cst_7 = arith.constant 1.280000e+02 : f32
    %12 = vector.broadcast %cst_7 : f32 to vector<16x1xf32>
    %13 = arith.divf %11, %12 : vector<16x1xf32>
    %cst_8 = arith.constant 9.99999974E-6 : f32
    %14 = vector.broadcast %cst_8 : f32 to vector<16x1xf32>
    %15 = arith.addf %13, %14 : vector<16x1xf32>
    %16 = math.rsqrt %15 : vector<16x1xf32>
    %17 = vector.broadcast %16 : vector<16x1xf32> to vector<16x128xf32>
    %18 = arith.mulf %8, %17 : vector<16x128xf32>
    %19 = vector.broadcast %1 : vector<1x128xf32> to vector<16x128xf32>
    %20 = arith.mulf %18, %19 : vector<16x128xf32>
    %21 = vector.broadcast %2 : vector<1x128xf32> to vector<16x128xf32>
    %22 = arith.addf %20, %21 : vector<16x128xf32>
    %23 = arith.truncf %22 : vector<16x128xf32> to vector<16x128xbf16>
    %c0_9 = arith.constant 0 : index
    %c0_10 = arith.constant 0 : index
    %24 = vector.load %arg4[%c0_9, %c0_10] : memref<128x384xbf16, #tpu.memory_space<vmem>>, vector<128x384xbf16>
    %cst_11 = arith.constant dense<0.000000e+00> : vector<16x384xf32>
    %25 = tpu.matmul %23, %24, %cst_11 {dimension_numbers = #tpu.dot_dimension_numbers<[1], [0], [0], [1], [0, 0, 1, 1], [], []>} : vector<16x128xbf16>, vector<128x384xbf16>, vector<16x384xf32> -> vector<16x384xf32>
    %26 = arith.truncf %25 : vector<16x384xf32> to vector<16x384xbf16>
    %c0_12 = arith.constant 0 : index
    %c0_13 = arith.constant 0 : index
    %27 = vector.load %arg5[%c0_12, %c0_13] : memref<16x384xbf16, #tpu.memory_space<vmem>>, vector<16x384xbf16>
    tpu.vector_store %arg5[%c0_12, %c0_13], %26 {strides = array<i32>} : memref<16x384xbf16, #tpu.memory_space<vmem>>, vector<16x384xbf16>,
    return
  }
  func.func @transform_0(%arg0: i32) -> (i32, i32) {
    %c0_i32 = arith.constant 0 : i32
    %c0_i32_0 = arith.constant 0 : i32
    return %arg0, %c0_i32 : i32, i32
  }
  func.func @transform_1(%arg0: i32) -> (i32, i32) {
    %c0_i32 = arith.constant 0 : i32
    %c0_i32_0 = arith.constant 0 : i32
    %c0_i32_1 = arith.constant 0 : i32
    return %c0_i32, %c0_i32_0 : i32, i32
  }
  func.func @transform_2(%arg0: i32) -> (i32, i32) {
    %c0_i32 = arith.constant 0 : i32
    %c0_i32_0 = arith.constant 0 : i32
    %c0_i32_1 = arith.constant 0 : i32
    return %c0_i32, %c0_i32_0 : i32, i32
  }
  func.func @transform_3(%arg0: i32) -> (i32, i32) {
    %c0_i32 = arith.constant 0 : i32
    %c0_i32_0 = arith.constant 0 : i32
    %c0_i32_1 = arith.constant 0 : i32
    return %c0_i32, %c0_i32_0 : i32, i32
  }
  func.func @transform_4(%arg0: i32) -> (i32, i32) {
    %c0_i32 = arith.constant 0 : i32
    %c0_i32_0 = arith.constant 0 : i32
    return %arg0, %c0_i32 : i32, i32
  }
}

module attributes {stable_mosaic.version = 11 : i64} {
  func.func @_proj_ffn_kernel(%arg0: i32, %arg1: i32, %arg2: memref<16x128xbf16, #tpu.memory_space<vmem>>, %arg3: memref<128x128xbf16, #tpu.memory_space<vmem>>, %arg4: memref<1x128xf32, #tpu.memory_space<vmem>>, %arg5: memref<16x128xf32, #tpu.memory_space<vmem>>, %arg6: memref<1x128xf32, #tpu.memory_space<vmem>>, %arg7: memref<1x128xf32, #tpu.memory_space<vmem>>, %arg8: memref<128x256xbf16, #tpu.memory_space<vmem>>, %arg9: memref<1x256xf32, #tpu.memory_space<vmem>>, %arg10: memref<256x128xbf16, #tpu.memory_space<vmem>>, %arg11: memref<1x128xf32, #tpu.memory_space<vmem>>, %arg12: memref<16x128xf32, #tpu.memory_space<vmem>>, %arg13: memref<16x128xf32, #tpu.memory_space<vmem>>, %arg14: memref<16x128xbf16, #tpu.memory_space<vmem>>, %arg15: memref<16x128xf32, #tpu.memory_space<vmem>>) attributes {dimension_semantics = [#tpu.dimension_semantics<parallel>, #tpu.dimension_semantics<arbitrary>], iteration_bounds = array<i64: 1, 1>, scalar_prefetch = 0 : i64, scratch_operands = 3 : i64, tpu.core_type = #tpu.core_type<tc>, window_params = [{transform_indices = @transform_0, window_bounds = array<i64: 16, 128>}, {pipeline_mode = #tpu.pipeline_mode<synchronous>, transform_indices = @transform_1, window_bounds = array<i64: 128, 128>}, {pipeline_mode = #tpu.pipeline_mode<synchronous>, transform_indices = @transform_2, window_bounds = array<i64: 1, 128>}, {transform_indices = @transform_3, window_bounds = array<i64: 16, 128>}, {pipeline_mode = #tpu.pipeline_mode<synchronous>, transform_indices = @transform_4, window_bounds = array<i64: 1, 128>}, {pipeline_mode = #tpu.pipeline_mode<synchronous>, transform_indices = @transform_5, window_bounds = array<i64: 1, 128>}, {transform_indices = @transform_6, window_bounds = array<i64: 128, 256>}, {transform_indices = @transform_7, window_bounds = array<i64: 1, 256>}, {transform_indices = @transform_8, window_bounds = array<i64: 256, 128>}, {pipeline_mode = #tpu.pipeline_mode<synchronous>, transform_indices = @transform_9, window_bounds = array<i64: 1, 128>}, {transform_indices = @transform_10, window_bounds = array<i64: 16, 128>}]} {
    %c0_i32 = arith.constant 0 : i32
    %0 = arith.cmpi eq, %arg1, %c0_i32 : i32
    %1 = arith.extui %0 : i1 to i32
    %c0_i32_0 = arith.constant 0 : i32
    %2 = arith.cmpi ne, %1, %c0_i32_0 : i32
    scf.if %2 {
      %c0_19 = arith.constant 0 : index
      %c0_20 = arith.constant 0 : index
      %31 = vector.load %arg2[%c0_19, %c0_20] : memref<16x128xbf16, #tpu.memory_space<vmem>>, vector<16x128xbf16>
      %c0_21 = arith.constant 0 : index
      %c0_22 = arith.constant 0 : index
      %32 = vector.load %arg3[%c0_21, %c0_22] : memref<128x128xbf16, #tpu.memory_space<vmem>>, vector<128x128xbf16>
      %cst_23 = arith.constant dense<0.000000e+00> : vector<16x128xf32>
      %33 = tpu.matmul %31, %32, %cst_23 {dimension_numbers = #tpu.dot_dimension_numbers<[1], [0], [0], [1], [0, 0, 1, 1], [], []>} : vector<16x128xbf16>, vector<128x128xbf16>, vector<16x128xf32> -> vector<16x128xf32>
      %c0_24 = arith.constant 0 : index
      %c0_25 = arith.constant 0 : index
      %34 = vector.load %arg4[%c0_24, %c0_25] : memref<1x128xf32, #tpu.memory_space<vmem>>, vector<1x128xf32>
      %35 = vector.broadcast %34 : vector<1x128xf32> to vector<16x128xf32>
      %36 = arith.addf %33, %35 : vector<16x128xf32>
      %c0_26 = arith.constant 0 : index
      %c0_27 = arith.constant 0 : index
      %37 = vector.load %arg5[%c0_26, %c0_27] : memref<16x128xf32, #tpu.memory_space<vmem>>, vector<16x128xf32>
      %38 = arith.addf %36, %37 : vector<16x128xf32>
      %c0_28 = arith.constant 0 : index
      %c0_29 = arith.constant 0 : index
      %39 = vector.load %arg13[%c0_28, %c0_29] : memref<16x128xf32, #tpu.memory_space<vmem>>, vector<16x128xf32>
      tpu.vector_store %arg13[%c0_28, %c0_29], %38 {strides = array<i32>} : memref<16x128xf32, #tpu.memory_space<vmem>>, vector<16x128xf32>,
      %c0_30 = arith.constant 0 : index
      %c0_31 = arith.constant 0 : index
      %40 = vector.load %arg6[%c0_30, %c0_31] : memref<1x128xf32, #tpu.memory_space<vmem>>, vector<1x128xf32>
      %c0_32 = arith.constant 0 : index
      %c0_33 = arith.constant 0 : index
      %41 = vector.load %arg7[%c0_32, %c0_33] : memref<1x128xf32, #tpu.memory_space<vmem>>, vector<1x128xf32>
      %cst_34 = arith.constant dense<0.000000e+00> : vector<16xf32>
      %42 = vector.multi_reduction <add>, %38, %cst_34 [1] : vector<16x128xf32> to vector<16xf32>
      %43 = vector.shape_cast %42 : vector<16xf32> to vector<16x1xf32>
      %cst_35 = arith.constant 1.280000e+02 : f32
      %44 = vector.broadcast %cst_35 : f32 to vector<16x1xf32>
      %45 = arith.divf %43, %44 : vector<16x1xf32>
      %46 = vector.broadcast %45 : vector<16x1xf32> to vector<16x128xf32>
      %47 = arith.subf %38, %46 : vector<16x128xf32>
      %48 = arith.mulf %47, %47 : vector<16x128xf32>
      %cst_36 = arith.constant dense<0.000000e+00> : vector<16xf32>
      %49 = vector.multi_reduction <add>, %48, %cst_36 [1] : vector<16x128xf32> to vector<16xf32>
      %50 = vector.shape_cast %49 : vector<16xf32> to vector<16x1xf32>
      %cst_37 = arith.constant 1.280000e+02 : f32
      %51 = vector.broadcast %cst_37 : f32 to vector<16x1xf32>
      %52 = arith.divf %50, %51 : vector<16x1xf32>
      %cst_38 = arith.constant 9.99999974E-6 : f32
      %53 = vector.broadcast %cst_38 : f32 to vector<16x1xf32>
      %54 = arith.addf %52, %53 : vector<16x1xf32>
      %55 = math.rsqrt %54 : vector<16x1xf32>
      %56 = vector.broadcast %55 : vector<16x1xf32> to vector<16x128xf32>
      %57 = arith.mulf %47, %56 : vector<16x128xf32>
      %58 = vector.broadcast %40 : vector<1x128xf32> to vector<16x128xf32>
      %59 = arith.mulf %57, %58 : vector<16x128xf32>
      %60 = vector.broadcast %41 : vector<1x128xf32> to vector<16x128xf32>
      %61 = arith.addf %59, %60 : vector<16x128xf32>
      %62 = arith.truncf %61 : vector<16x128xf32> to vector<16x128xbf16>
      %c0_39 = arith.constant 0 : index
      %c0_40 = arith.constant 0 : index
      %63 = vector.load %arg14[%c0_39, %c0_40] : memref<16x128xbf16, #tpu.memory_space<vmem>>, vector<16x128xbf16>
      tpu.vector_store %arg14[%c0_39, %c0_40], %62 {strides = array<i32>} : memref<16x128xbf16, #tpu.memory_space<vmem>>, vector<16x128xbf16>,
      %cst_41 = arith.constant 0.000000e+00 : f32
      %64 = vector.broadcast %cst_41 : f32 to vector<16x128xf32>
      %c0_42 = arith.constant 0 : index
      %c0_43 = arith.constant 0 : index
      %65 = vector.load %arg15[%c0_42, %c0_43] : memref<16x128xf32, #tpu.memory_space<vmem>>, vector<16x128xf32>
      tpu.vector_store %arg15[%c0_42, %c0_43], %64 {strides = array<i32>} : memref<16x128xf32, #tpu.memory_space<vmem>>, vector<16x128xf32>,
    } else {
    }
    %c0 = arith.constant 0 : index
    %c0_1 = arith.constant 0 : index
    %3 = vector.load %arg14[%c0, %c0_1] : memref<16x128xbf16, #tpu.memory_space<vmem>>, vector<16x128xbf16>
    %c0_2 = arith.constant 0 : index
    %c0_3 = arith.constant 0 : index
    %4 = vector.load %arg8[%c0_2, %c0_3] : memref<128x256xbf16, #tpu.memory_space<vmem>>, vector<128x256xbf16>
    %cst = arith.constant dense<0.000000e+00> : vector<16x256xf32>
    %5 = tpu.matmul %3, %4, %cst {dimension_numbers = #tpu.dot_dimension_numbers<[1], [0], [0], [1], [0, 0, 1, 1], [], []>} : vector<16x128xbf16>, vector<128x256xbf16>, vector<16x256xf32> -> vector<16x256xf32>
    %c0_4 = arith.constant 0 : index
    %c0_5 = arith.constant 0 : index
    %6 = vector.load %arg9[%c0_4, %c0_5] : memref<1x256xf32, #tpu.memory_space<vmem>>, vector<1x256xf32>
    %7 = vector.broadcast %6 : vector<1x256xf32> to vector<16x256xf32>
    %8 = arith.addf %5, %7 : vector<16x256xf32>
    %cst_6 = arith.constant 5.000000e-01 : f32
    %9 = vector.broadcast %cst_6 : f32 to vector<16x256xf32>
    %10 = arith.mulf %9, %8 : vector<16x256xf32>
    %cst_7 = arith.constant 4.471500e-02 : f32
    %11 = vector.broadcast %cst_7 : f32 to vector<16x256xf32>
    %12 = arith.mulf %11, %8 : vector<16x256xf32>
    %13 = arith.mulf %12, %8 : vector<16x256xf32>
    %14 = arith.mulf %13, %8 : vector<16x256xf32>
    %15 = arith.addf %8, %14 : vector<16x256xf32>
    %cst_8 = arith.constant 0.797884583 : f32
    %16 = vector.broadcast %cst_8 : f32 to vector<16x256xf32>
    %17 = arith.mulf %16, %15 : vector<16x256xf32>
    %18 = math.tanh %17 : vector<16x256xf32>
    %cst_9 = arith.constant 1.000000e+00 : f32
    %19 = vector.broadcast %cst_9 : f32 to vector<16x256xf32>
    %20 = arith.addf %19, %18 : vector<16x256xf32>
    %21 = arith.mulf %10, %20 : vector<16x256xf32>
    %c0_10 = arith.constant 0 : index
    %c0_11 = arith.constant 0 : index
    %22 = vector.load %arg15[%c0_10, %c0_11] : memref<16x128xf32, #tpu.memory_space<vmem>>, vector<16x128xf32>
    %23 = arith.truncf %21 : vector<16x256xf32> to vector<16x256xbf16>
    %c0_12 = arith.constant 0 : index
    %c0_13 = arith.constant 0 : index
    %24 = vector.load %arg10[%c0_12, %c0_13] : memref<256x128xbf16, #tpu.memory_space<vmem>>, vector<256x128xbf16>
    %cst_14 = arith.constant dense<0.000000e+00> : vector<16x128xf32>
    %25 = tpu.matmul %23, %24, %cst_14 {dimension_numbers = #tpu.dot_dimension_numbers<[1], [0], [0], [1], [0, 0, 1, 1], [], []>} : vector<16x256xbf16>, vector<256x128xbf16>, vector<16x128xf32> -> vector<16x128xf32>
    %26 = arith.addf %22, %25 : vector<16x128xf32>
    %c0_15 = arith.constant 0 : index
    %c0_16 = arith.constant 0 : index
    %27 = vector.load %arg15[%c0_15, %c0_16] : memref<16x128xf32, #tpu.memory_space<vmem>>, vector<16x128xf32>
    tpu.vector_store %arg15[%c0_15, %c0_16], %26 {strides = array<i32>} : memref<16x128xf32, #tpu.memory_space<vmem>>, vector<16x128xf32>,
    %c0_i32_17 = arith.constant 0 : i32
    %28 = arith.cmpi eq, %arg1, %c0_i32_17 : i32
    %29 = arith.extui %28 : i1 to i32
    %c0_i32_18 = arith.constant 0 : i32
    %30 = arith.cmpi ne, %29, %c0_i32_18 : i32
    scf.if %30 {
      %c0_19 = arith.constant 0 : index
      %c0_20 = arith.constant 0 : index
      %31 = vector.load %arg15[%c0_19, %c0_20] : memref<16x128xf32, #tpu.memory_space<vmem>>, vector<16x128xf32>
      %c0_21 = arith.constant 0 : index
      %c0_22 = arith.constant 0 : index
      %32 = vector.load %arg11[%c0_21, %c0_22] : memref<1x128xf32, #tpu.memory_space<vmem>>, vector<1x128xf32>
      %33 = vector.broadcast %32 : vector<1x128xf32> to vector<16x128xf32>
      %34 = arith.addf %31, %33 : vector<16x128xf32>
      %c0_23 = arith.constant 0 : index
      %c0_24 = arith.constant 0 : index
      %35 = vector.load %arg13[%c0_23, %c0_24] : memref<16x128xf32, #tpu.memory_space<vmem>>, vector<16x128xf32>
      %36 = arith.addf %34, %35 : vector<16x128xf32>
      %c0_25 = arith.constant 0 : index
      %c0_26 = arith.constant 0 : index
      %37 = vector.load %arg12[%c0_25, %c0_26] : memref<16x128xf32, #tpu.memory_space<vmem>>, vector<16x128xf32>
      tpu.vector_store %arg12[%c0_25, %c0_26], %36 {strides = array<i32>} : memref<16x128xf32, #tpu.memory_space<vmem>>, vector<16x128xf32>,
    } else {
    }
    return
  }
  func.func @transform_0(%arg0: i32, %arg1: i32) -> (i32, i32) {
    %c0_i32 = arith.constant 0 : i32
    %c0_i32_0 = arith.constant 0 : i32
    return %arg0, %c0_i32 : i32, i32
  }
  func.func @transform_1(%arg0: i32, %arg1: i32) -> (i32, i32) {
    %c0_i32 = arith.constant 0 : i32
    %c0_i32_0 = arith.constant 0 : i32
    %c0_i32_1 = arith.constant 0 : i32
    return %c0_i32, %c0_i32_0 : i32, i32
  }
  func.func @transform_2(%arg0: i32, %arg1: i32) -> (i32, i32) {
    %c0_i32 = arith.constant 0 : i32
    %c0_i32_0 = arith.constant 0 : i32
    %c0_i32_1 = arith.constant 0 : i32
    return %c0_i32, %c0_i32_0 : i32, i32
  }
  func.func @transform_3(%arg0: i32, %arg1: i32) -> (i32, i32) {
    %c0_i32 = arith.constant 0 : i32
    %c0_i32_0 = arith.constant 0 : i32
    return %arg0, %c0_i32 : i32, i32
  }
  func.func @transform_4(%arg0: i32, %arg1: i32) -> (i32, i32) {
    %c0_i32 = arith.constant 0 : i32
    %c0_i32_0 = arith.constant 0 : i32
    %c0_i32_1 = arith.constant 0 : i32
    return %c0_i32, %c0_i32_0 : i32, i32
  }
  func.func @transform_5(%arg0: i32, %arg1: i32) -> (i32, i32) {
    %c0_i32 = arith.constant 0 : i32
    %c0_i32_0 = arith.constant 0 : i32
    %c0_i32_1 = arith.constant 0 : i32
    return %c0_i32, %c0_i32_0 : i32, i32
  }
  func.func @transform_6(%arg0: i32, %arg1: i32) -> (i32, i32) {
    %c0_i32 = arith.constant 0 : i32
    %c0_i32_0 = arith.constant 0 : i32
    return %c0_i32, %arg1 : i32, i32
  }
  func.func @transform_7(%arg0: i32, %arg1: i32) -> (i32, i32) {
    %c0_i32 = arith.constant 0 : i32
    %c0_i32_0 = arith.constant 0 : i32
    return %c0_i32, %arg1 : i32, i32
  }
  func.func @transform_8(%arg0: i32, %arg1: i32) -> (i32, i32) {
    %c0_i32 = arith.constant 0 : i32
    %c0_i32_0 = arith.constant 0 : i32
    return %arg1, %c0_i32 : i32, i32
  }
  func.func @transform_9(%arg0: i32, %arg1: i32) -> (i32, i32) {
    %c0_i32 = arith.constant 0 : i32
    %c0_i32_0 = arith.constant 0 : i32
    %c0_i32_1 = arith.constant 0 : i32
    return %c0_i32, %c0_i32_0 : i32, i32
  }
  func.func @transform_10(%arg0: i32, %arg1: i32) -> (i32, i32) {
    %c0_i32 = arith.constant 0 : i32
    %c0_i32_0 = arith.constant 0 : i32
    return %arg0, %c0_i32 : i32, i32
  }
}

module attributes {stable_mosaic.version = 11 : i64} {
  func.func @_proj_ffn_kernel(%arg0: i32, %arg1: i32, %arg2: memref<16x128xbf16, #tpu.memory_space<vmem>>, %arg3: memref<128x128xbf16, #tpu.memory_space<vmem>>, %arg4: memref<1x128xf32, #tpu.memory_space<vmem>>, %arg5: memref<16x128xf32, #tpu.memory_space<vmem>>, %arg6: memref<1x128xf32, #tpu.memory_space<vmem>>, %arg7: memref<1x128xf32, #tpu.memory_space<vmem>>, %arg8: memref<128x256xbf16, #tpu.memory_space<vmem>>, %arg9: memref<1x256xf32, #tpu.memory_space<vmem>>, %arg10: memref<256x128xbf16, #tpu.memory_space<vmem>>, %arg11: memref<1x128xf32, #tpu.memory_space<vmem>>, %arg12: memref<16x128xf32, #tpu.memory_space<vmem>>, %arg13: memref<16x128xf32, #tpu.memory_space<vmem>>, %arg14: memref<16x128xbf16, #tpu.memory_space<vmem>>, %arg15: memref<16x128xf32, #tpu.memory_space<vmem>>) attributes {dimension_semantics = [#tpu.dimension_semantics<parallel>, #tpu.dimension_semantics<arbitrary>], iteration_bounds = array<i64: 1, 1>, scalar_prefetch = 0 : i64, scratch_operands = 3 : i64, tpu.core_type = #tpu.core_type<tc>, window_params = [{transform_indices = @transform_0, window_bounds = array<i64: 16, 128>}, {pipeline_mode = #tpu.pipeline_mode<synchronous>, transform_indices = @transform_1, window_bounds = array<i64: 128, 128>}, {pipeline_mode = #tpu.pipeline_mode<synchronous>, transform_indices = @transform_2, window_bounds = array<i64: 1, 128>}, {transform_indices = @transform_3, window_bounds = array<i64: 16, 128>}, {pipeline_mode = #tpu.pipeline_mode<synchronous>, transform_indices = @transform_4, window_bounds = array<i64: 1, 128>}, {pipeline_mode = #tpu.pipeline_mode<synchronous>, transform_indices = @transform_5, window_bounds = array<i64: 1, 128>}, {transform_indices = @transform_6, window_bounds = array<i64: 128, 256>}, {transform_indices = @transform_7, window_bounds = array<i64: 1, 256>}, {transform_indices = @transform_8, window_bounds = array<i64: 256, 128>}, {pipeline_mode = #tpu.pipeline_mode<synchronous>, transform_indices = @transform_9, window_bounds = array<i64: 1, 128>}, {transform_indices = @transform_10, window_bounds = array<i64: 16, 128>}]} {
    %c0_i32 = arith.constant 0 : i32
    %0 = arith.cmpi eq, %arg1, %c0_i32 : i32
    %1 = arith.extui %0 : i1 to i32
    %c0_i32_0 = arith.constant 0 : i32
    %2 = arith.cmpi ne, %1, %c0_i32_0 : i32
    scf.if %2 {
      %c0_19 = arith.constant 0 : index
      %c0_20 = arith.constant 0 : index
      %31 = vector.load %arg2[%c0_19, %c0_20] : memref<16x128xbf16, #tpu.memory_space<vmem>>, vector<16x128xbf16>
      %c0_21 = arith.constant 0 : index
      %c0_22 = arith.constant 0 : index
      %32 = vector.load %arg3[%c0_21, %c0_22] : memref<128x128xbf16, #tpu.memory_space<vmem>>, vector<128x128xbf16>
      %cst_23 = arith.constant dense<0.000000e+00> : vector<16x128xf32>
      %33 = tpu.matmul %31, %32, %cst_23 {dimension_numbers = #tpu.dot_dimension_numbers<[1], [0], [0], [1], [0, 0, 1, 1], [], []>} : vector<16x128xbf16>, vector<128x128xbf16>, vector<16x128xf32> -> vector<16x128xf32>
      %c0_24 = arith.constant 0 : index
      %c0_25 = arith.constant 0 : index
      %34 = vector.load %arg4[%c0_24, %c0_25] : memref<1x128xf32, #tpu.memory_space<vmem>>, vector<1x128xf32>
      %35 = vector.broadcast %34 : vector<1x128xf32> to vector<16x128xf32>
      %36 = arith.addf %33, %35 : vector<16x128xf32>
      %c0_26 = arith.constant 0 : index
      %c0_27 = arith.constant 0 : index
      %37 = vector.load %arg5[%c0_26, %c0_27] : memref<16x128xf32, #tpu.memory_space<vmem>>, vector<16x128xf32>
      %38 = arith.addf %36, %37 : vector<16x128xf32>
      %c0_28 = arith.constant 0 : index
      %c0_29 = arith.constant 0 : index
      %39 = vector.load %arg13[%c0_28, %c0_29] : memref<16x128xf32, #tpu.memory_space<vmem>>, vector<16x128xf32>
      tpu.vector_store %arg13[%c0_28, %c0_29], %38 {strides = array<i32>} : memref<16x128xf32, #tpu.memory_space<vmem>>, vector<16x128xf32>,
      %c0_30 = arith.constant 0 : index
      %c0_31 = arith.constant 0 : index
      %40 = vector.load %arg6[%c0_30, %c0_31] : memref<1x128xf32, #tpu.memory_space<vmem>>, vector<1x128xf32>
      %c0_32 = arith.constant 0 : index
      %c0_33 = arith.constant 0 : index
      %41 = vector.load %arg7[%c0_32, %c0_33] : memref<1x128xf32, #tpu.memory_space<vmem>>, vector<1x128xf32>
      %cst_34 = arith.constant dense<0.000000e+00> : vector<16xf32>
      %42 = vector.multi_reduction <add>, %38, %cst_34 [1] : vector<16x128xf32> to vector<16xf32>
      %43 = vector.shape_cast %42 : vector<16xf32> to vector<16x1xf32>
      %cst_35 = arith.constant 1.280000e+02 : f32
      %44 = vector.broadcast %cst_35 : f32 to vector<16x1xf32>
      %45 = arith.divf %43, %44 : vector<16x1xf32>
      %46 = vector.broadcast %45 : vector<16x1xf32> to vector<16x128xf32>
      %47 = arith.subf %38, %46 : vector<16x128xf32>
      %48 = arith.mulf %47, %47 : vector<16x128xf32>
      %cst_36 = arith.constant dense<0.000000e+00> : vector<16xf32>
      %49 = vector.multi_reduction <add>, %48, %cst_36 [1] : vector<16x128xf32> to vector<16xf32>
      %50 = vector.shape_cast %49 : vector<16xf32> to vector<16x1xf32>
      %cst_37 = arith.constant 1.280000e+02 : f32
      %51 = vector.broadcast %cst_37 : f32 to vector<16x1xf32>
      %52 = arith.divf %50, %51 : vector<16x1xf32>
      %cst_38 = arith.constant 9.99999974E-6 : f32
      %53 = vector.broadcast %cst_38 : f32 to vector<16x1xf32>
      %54 = arith.addf %52, %53 : vector<16x1xf32>
      %55 = math.rsqrt %54 : vector<16x1xf32>
      %56 = vector.broadcast %55 : vector<16x1xf32> to vector<16x128xf32>
      %57 = arith.mulf %47, %56 : vector<16x128xf32>
      %58 = vector.broadcast %40 : vector<1x128xf32> to vector<16x128xf32>
      %59 = arith.mulf %57, %58 : vector<16x128xf32>
      %60 = vector.broadcast %41 : vector<1x128xf32> to vector<16x128xf32>
      %61 = arith.addf %59, %60 : vector<16x128xf32>
      %62 = arith.truncf %61 : vector<16x128xf32> to vector<16x128xbf16>
      %c0_39 = arith.constant 0 : index
      %c0_40 = arith.constant 0 : index
      %63 = vector.load %arg14[%c0_39, %c0_40] : memref<16x128xbf16, #tpu.memory_space<vmem>>, vector<16x128xbf16>
      tpu.vector_store %arg14[%c0_39, %c0_40], %62 {strides = array<i32>} : memref<16x128xbf16, #tpu.memory_space<vmem>>, vector<16x128xbf16>,
      %cst_41 = arith.constant 0.000000e+00 : f32
      %64 = vector.broadcast %cst_41 : f32 to vector<16x128xf32>
      %c0_42 = arith.constant 0 : index
      %c0_43 = arith.constant 0 : index
      %65 = vector.load %arg15[%c0_42, %c0_43] : memref<16x128xf32, #tpu.memory_space<vmem>>, vector<16x128xf32>
      tpu.vector_store %arg15[%c0_42, %c0_43], %64 {strides = array<i32>} : memref<16x128xf32, #tpu.memory_space<vmem>>, vector<16x128xf32>,
    } else {
    }
    %c0 = arith.constant 0 : index
    %c0_1 = arith.constant 0 : index
    %3 = vector.load %arg14[%c0, %c0_1] : memref<16x128xbf16, #tpu.memory_space<vmem>>, vector<16x128xbf16>
    %c0_2 = arith.constant 0 : index
    %c0_3 = arith.constant 0 : index
    %4 = vector.load %arg8[%c0_2, %c0_3] : memref<128x256xbf16, #tpu.memory_space<vmem>>, vector<128x256xbf16>
    %cst = arith.constant dense<0.000000e+00> : vector<16x256xf32>
    %5 = tpu.matmul %3, %4, %cst {dimension_numbers = #tpu.dot_dimension_numbers<[1], [0], [0], [1], [0, 0, 1, 1], [], []>} : vector<16x128xbf16>, vector<128x256xbf16>, vector<16x256xf32> -> vector<16x256xf32>
    %c0_4 = arith.constant 0 : index
    %c0_5 = arith.constant 0 : index
    %6 = vector.load %arg9[%c0_4, %c0_5] : memref<1x256xf32, #tpu.memory_space<vmem>>, vector<1x256xf32>
    %7 = vector.broadcast %6 : vector<1x256xf32> to vector<16x256xf32>
    %8 = arith.addf %5, %7 : vector<16x256xf32>
    %cst_6 = arith.constant 5.000000e-01 : f32
    %9 = vector.broadcast %cst_6 : f32 to vector<16x256xf32>
    %10 = arith.mulf %9, %8 : vector<16x256xf32>
    %cst_7 = arith.constant 4.471500e-02 : f32
    %11 = vector.broadcast %cst_7 : f32 to vector<16x256xf32>
    %12 = arith.mulf %11, %8 : vector<16x256xf32>
    %13 = arith.mulf %12, %8 : vector<16x256xf32>
    %14 = arith.mulf %13, %8 : vector<16x256xf32>
    %15 = arith.addf %8, %14 : vector<16x256xf32>
    %cst_8 = arith.constant 0.797884583 : f32
    %16 = vector.broadcast %cst_8 : f32 to vector<16x256xf32>
    %17 = arith.mulf %16, %15 : vector<16x256xf32>
    %18 = math.tanh %17 : vector<16x256xf32>
    %cst_9 = arith.constant 1.000000e+00 : f32
    %19 = vector.broadcast %cst_9 : f32 to vector<16x256xf32>
    %20 = arith.addf %19, %18 : vector<16x256xf32>
    %21 = arith.mulf %10, %20 : vector<16x256xf32>
    %c0_10 = arith.constant 0 : index
    %c0_11 = arith.constant 0 : index
    %22 = vector.load %arg15[%c0_10, %c0_11] : memref<16x128xf32, #tpu.memory_space<vmem>>, vector<16x128xf32>
    %23 = arith.truncf %21 : vector<16x256xf32> to vector<16x256xbf16>
    %c0_12 = arith.constant 0 : index
    %c0_13 = arith.constant 0 : index
    %24 = vector.load %arg10[%c0_12, %c0_13] : memref<256x128xbf16, #tpu.memory_space<vmem>>, vector<256x128xbf16>
    %cst_14 = arith.constant dense<0.000000e+00> : vector<16x128xf32>
    %25 = tpu.matmul %23, %24, %cst_14 {dimension_numbers = #tpu.dot_dimension_numbers<[1], [0], [0], [1], [0, 0, 1, 1], [], []>} : vector<16x256xbf16>, vector<256x128xbf16>, vector<16x128xf32> -> vector<16x128xf32>
    %26 = arith.addf %22, %25 : vector<16x128xf32>
    %c0_15 = arith.constant 0 : index
    %c0_16 = arith.constant 0 : index
    %27 = vector.load %arg15[%c0_15, %c0_16] : memref<16x128xf32, #tpu.memory_space<vmem>>, vector<16x128xf32>
    tpu.vector_store %arg15[%c0_15, %c0_16], %26 {strides = array<i32>} : memref<16x128xf32, #tpu.memory_space<vmem>>, vector<16x128xf32>,
    %c0_i32_17 = arith.constant 0 : i32
    %28 = arith.cmpi eq, %arg1, %c0_i32_17 : i32
    %29 = arith.extui %28 : i1 to i32
    %c0_i32_18 = arith.constant 0 : i32
    %30 = arith.cmpi ne, %29, %c0_i32_18 : i32
    scf.if %30 {
      %c0_19 = arith.constant 0 : index
      %c0_20 = arith.constant 0 : index
      %31 = vector.load %arg15[%c0_19, %c0_20] : memref<16x128xf32, #tpu.memory_space<vmem>>, vector<16x128xf32>
      %c0_21 = arith.constant 0 : index
      %c0_22 = arith.constant 0 : index
      %32 = vector.load %arg11[%c0_21, %c0_22] : memref<1x128xf32, #tpu.memory_space<vmem>>, vector<1x128xf32>
      %33 = vector.broadcast %32 : vector<1x128xf32> to vector<16x128xf32>
      %34 = arith.addf %31, %33 : vector<16x128xf32>
      %c0_23 = arith.constant 0 : index
      %c0_24 = arith.constant 0 : index
      %35 = vector.load %arg13[%c0_23, %c0_24] : memref<16x128xf32, #tpu.memory_space<vmem>>, vector<16x128xf32>
      %36 = arith.addf %34, %35 : vector<16x128xf32>
      %c0_25 = arith.constant 0 : index
      %c0_26 = arith.constant 0 : index
      %37 = vector.load %arg12[%c0_25, %c0_26] : memref<16x128xf32, #tpu.memory_space<vmem>>, vector<16x128xf32>
      tpu.vector_store %arg12[%c0_25, %c0_26], %36 {strides = array<i32>} : memref<16x128xf32, #tpu.memory_space<vmem>>, vector<16x128xf32>,
    } else {
    }
    return
  }
  func.func @transform_0(%arg0: i32, %arg1: i32) -> (i32, i32) {
    %c0_i32 = arith.constant 0 : i32
    %c0_i32_0 = arith.constant 0 : i32
    return %arg0, %c0_i32 : i32, i32
  }
  func.func @transform_1(%arg0: i32, %arg1: i32) -> (i32, i32) {
    %c0_i32 = arith.constant 0 : i32
    %c0_i32_0 = arith.constant 0 : i32
    %c0_i32_1 = arith.constant 0 : i32
    return %c0_i32, %c0_i32_0 : i32, i32
  }
  func.func @transform_2(%arg0: i32, %arg1: i32) -> (i32, i32) {
    %c0_i32 = arith.constant 0 : i32
    %c0_i32_0 = arith.constant 0 : i32
    %c0_i32_1 = arith.constant 0 : i32
    return %c0_i32, %c0_i32_0 : i32, i32
  }
  func.func @transform_3(%arg0: i32, %arg1: i32) -> (i32, i32) {
    %c0_i32 = arith.constant 0 : i32
    %c0_i32_0 = arith.constant 0 : i32
    return %arg0, %c0_i32 : i32, i32
  }
  func.func @transform_4(%arg0: i32, %arg1: i32) -> (i32, i32) {
    %c0_i32 = arith.constant 0 : i32
    %c0_i32_0 = arith.constant 0 : i32
    %c0_i32_1 = arith.constant 0 : i32
    return %c0_i32, %c0_i32_0 : i32, i32
  }
  func.func @transform_5(%arg0: i32, %arg1: i32) -> (i32, i32) {
    %c0_i32 = arith.constant 0 : i32
    %c0_i32_0 = arith.constant 0 : i32
    %c0_i32_1 = arith.constant 0 : i32
    return %c0_i32, %c0_i32_0 : i32, i32
  }
  func.func @transform_6(%arg0: i32, %arg1: i32) -> (i32, i32) {
    %c0_i32 = arith.constant 0 : i32
    %c0_i32_0 = arith.constant 0 : i32
    return %c0_i32, %arg1 : i32, i32
  }
  func.func @transform_7(%arg0: i32, %arg1: i32) -> (i32, i32) {
    %c0_i32 = arith.constant 0 : i32
    %c0_i32_0 = arith.constant 0 : i32
    return %c0_i32, %arg1 : i32, i32
  }
  func.func @transform_8(%arg0: i32, %arg1: i32) -> (i32, i32) {
    %c0_i32 = arith.constant 0 : i32
    %c0_i32_0 = arith.constant 0 : i32
    return %arg1, %c0_i32 : i32, i32
  }
  func.func @transform_9(%arg0: i32, %arg1: i32) -> (i32, i32) {
    %c0_i32 = arith.constant 0 : i32
    %c0_i32_0 = arith.constant 0 : i32
    %c0_i32_1 = arith.constant 0 : i32
    return %c0_i32, %c0_i32_0 : i32, i32
  }
  func.func @transform_10(%arg0: i32, %arg1: i32) -> (i32, i32) {
    %c0_i32 = arith.constant 0 : i32
    %c0_i32_0 = arith.constant 0 : i32
    return %arg0, %c0_i32 : i32, i32
  }
}

</mosaic_0001>

<bundles_post_ra>
// kernel: transformer_forward.6
= control target key start
LH: loop header
LB: loop body
LE: loop exit
PB: predicated region body
PF: predicated region fallthrough
CT: control target
= control target key end

     0   :  { %v436_v3 = vmov 0.0   ;;  %v437_v30 = vmov 0   ;;  %vm438_vm0 = vmmov 0   ;;  %s579_s0 = inlined_call_operand.vmem [shape: f32[16,128], index: 0, kind: input, shape index: {}]   ;;  %s580_s3 = inlined_call_operand.vmem [shape: bf16[128,384], index: 3, kind: input, shape index: {}]   ;;  %s581_s1 = inlined_call_operand.vmem [shape: f32[1,128], index: 1, kind: input, shape index: {}]   ;;  %s582_s2 = inlined_call_operand.vmem [shape: f32[1,128], index: 2, kind: input, shape index: {}]   ;;  %s583_s4 = inlined_call_operand.vmem [shape: bf16[16,384], index: 4, kind: output, shape index: {}]  }
   0x1   :  { %v18_v0 = vld [vmem:[%s579_s0] sm:$0xff]  ;;  %v19_v1 = vld [vmem:[%s579_s0 + $0x8] sm:$0xff]  ;;  %377 = vmatprep.subr.bf16.mxu1 %v436_v3  ;;  %v410_v18 = vld [vmem:[%s580_s3 + $0x30] ss:$12 sps:$4 sm:$0xff]   ;;  %254 = vmatprep.mubr.bf16.mxu0 %v437_v30 }
   0x2   :  { %22 = vadd.xlane.f32.xlu0 %v18_v0  ;;  %v400_v2 = vld [vmem:[%s580_s3 + $0x4] ss:$12 sps:$4 sm:$0xff]   ;;  %v402_v4 = vld [vmem:[%s580_s3] ss:$12 sps:$4 sm:$0xff]   ;;  %v403_v5 = vld [vmem:[%s580_s3 + $0x8] ss:$12 sps:$4 sm:$0xff]   ;;  %393 = vmatprep.mubr.msk.bf16.mxu1 %vm438_vm0, %v436_v3 }
   0x3   :  { %222 = vmatprep.subr.bf16.mxu0 %v400_v2  ;;  %v404_v6 = vld [vmem:[%s580_s3 + $0x1c] ss:$12 sps:$4 sm:$0xff]   ;;  %378 = vmatpush3.bf16.msra.mxu1 %v403_v5  ;;  %v406_v15 = vld [vmem:[%s580_s3 + $0x18] ss:$12 sps:$4 sm:$0xff]   ;;  %v407_v16 = vld [vmem:[%s580_s3 + $0x20] ss:$12 sps:$4 sm:$0xff]  }
   0x4   :  { %223 = vmatpush1.bf16.msra.mxu0 %v402_v4  ;;  %379 = vmatprep.subr.bf16.mxu1 %v436_v3  ;;  %v408_v17 = vld [vmem:[%s580_s3 + $0x34] ss:$12 sps:$4 sm:$0xff]   ;;  %v411_v19 = vld [vmem:[%s580_s3 + $0x38] ss:$12 sps:$4 sm:$0xff]   ;;  %v415_v22 = vld [vmem:[%s580_s3 + $0x50] ss:$12 sps:$4 sm:$0xff]  }
   0x5   :  { %224 = vmatprep.subr.bf16.mxu0 %v404_v6  ;;  %v412_v20 = vld [vmem:[%s580_s3 + $0x4c] ss:$12 sps:$4 sm:$0xff]   ;;  %v414_v21 = vld [vmem:[%s580_s3 + $0x48] ss:$12 sps:$4 sm:$0xff]   ;;  %v416_v23 = vld [vmem:[%s580_s3 + $0x64] ss:$12 sps:$4 sm:$0xff]  }
   0x6   :  { %24 = vadd.xlane.f32.xlu0 %v19_v1  ;;  %v418_v24 = vld [vmem:[%s580_s3 + $0x60] ss:$12 sps:$4 sm:$0xff]   ;;  %v419_v25 = vld [vmem:[%s580_s3 + $0x68] ss:$12 sps:$4 sm:$0xff]   ;;  %v422_v27 = vld [vmem:[%s580_s3 + $0x78] ss:$12 sps:$4 sm:$0xff]  }
   0x7   :  { %380 = vmatpush3.bf16.msra.mxu1 %v407_v16  ;;  %v420_v26 = vld [vmem:[%s580_s3 + $0x7c] ss:$12 sps:$4 sm:$0xff]   ;;  %v423_v28 = vld [vmem:[%s580_s3 + $0x80] ss:$12 sps:$4 sm:$0xff]   ;;  %v427_v32 = vld [vmem:[%s580_s3 + $0x98] ss:$12 sps:$4 sm:$0xff]  }
   0x8   :  { %225 = vmatpush1.bf16.msra.mxu0 %v406_v15  ;;  %381 = vmatprep.subr.bf16.mxu1 %v436_v3  ;;  %v424_v29 = vld [vmem:[%s580_s3 + $0x94] ss:$12 sps:$4 sm:$0xff]   ;;  %v426_v31 = vld [vmem:[%s580_s3 + $0x90] ss:$12 sps:$4 sm:$0xff]   ;;  %v428_v33 = vld [vmem:[%s580_s3 + $0xac] ss:$12 sps:$4 sm:$0xff]  }
   0x9   :  { %226 = vmatprep.subr.bf16.mxu0 %v408_v17  ;;  %v430_v34 = vld [vmem:[%s580_s3 + $0xa8] ss:$12 sps:$4 sm:$0xff]   ;;  %v431_v35 = vld [vmem:[%s580_s3 + $0xb0] ss:$12 sps:$4 sm:$0xff]   ;;  %v334_v44 = vld [vmem:[%s581_s1] ss:$0 sm:$0xff] }
   0xa   :  { %v335_v48 = vld [vmem:[%s582_s2] ss:$0 sm:$0xff] }
   0xb   :  { %382 = vmatpush3.bf16.msra.mxu1 %v411_v19 }
   0xc   :  { %227 = vmatpush1.bf16.msra.mxu0 %v410_v18  ;;  %383 = vmatprep.subr.bf16.mxu1 %v436_v3 }
   0xd   :  { %228 = vmatprep.subr.bf16.mxu0 %v412_v20 }
   0xf   :  { %384 = vmatpush3.bf16.msra.mxu1 %v415_v22 }
  0x10   :  { %229 = vmatpush1.bf16.msra.mxu0 %v414_v21  ;;  %385 = vmatprep.subr.bf16.mxu1 %v436_v3 }
  0x11   :  { %230 = vmatprep.subr.bf16.mxu0 %v416_v23 }
  0x13   :  { %386 = vmatpush3.bf16.msra.mxu1 %v419_v25 }
  0x14   :  { %231 = vmatpush1.bf16.msra.mxu0 %v418_v24  ;;  %387 = vmatprep.subr.bf16.mxu1 %v436_v3 }
  0x15   :  { %232 = vmatprep.subr.bf16.mxu0 %v420_v26 }
  0x17   :  { %388 = vmatpush3.bf16.msra.mxu1 %v423_v28 }
  0x18   :  { %233 = vmatpush1.bf16.msra.mxu0 %v422_v27  ;;  %389 = vmatprep.subr.bf16.mxu1 %v436_v3 }
  0x19   :  { %234 = vmatprep.subr.bf16.mxu0 %v424_v29 }
  0x1b   :  { %390 = vmatpush3.bf16.msra.mxu1 %v427_v32 }
  0x1c   :  { %235 = vmatpush1.bf16.msra.mxu0 %v426_v31  ;;  %391 = vmatprep.subr.bf16.mxu1 %v436_v3 }
  0x1d   :  { %236 = vmatprep.subr.bf16.mxu0 %v428_v33 }
  0x1f   :  { %392 = vmatpush3.bf16.msra.mxu1 %v431_v35 }
  0x20   :  { %237 = vmatpush1.bf16.msra.mxu0 %v430_v34 }
  0x8f   :  { %v23_v7 = vpop.xlane.xlu0 %22 }
  0x90   :  { %v27_v8 = vmul.f32 0.0078125, %v23_v7 }
  0x92   :  { %v484_v9 = vsub.f32 %v18_v0, %v27_v8 }
  0x93   :  { %v25_v10 = vpop.xlane.xlu0 %24 }
  0x94   :  { %v28_v11 = vmul.f32 0.0078125, %v25_v10  ;;  %v31_v12 = vmul.f32 %v484_v9, %v484_v9 }
  0x96   :  { %v488_v13 = vsub.f32 %v19_v1, %v28_v11  ;;  %33 = vadd.xlane.f32.xlu1 %v31_v12 }
  0x98   :  { %v32_v14 = vmul.f32 %v488_v13, %v488_v13 }
  0x9a   :  { %35 = vadd.xlane.f32.xlu1 %v32_v14 }
 0x123   :  { %v34_v36 = vpop.xlane.xlu1 %33 }
 0x124   :  { %v37_v37 = vmul.f32 0.0078125, %v34_v36 }
 0x126   :  { %v39_v38 = vadd.f32 1e-05, %v37_v37 }
 0x127   :  { %v36_v39 = vpop.xlane.xlu1 %35 }
 0x128   :  { %432 = vrsqrt.f32 %v39_v38  ;;  %v38_v40 = vmul.f32 0.0078125, %v36_v39 }
 0x12a   :  { %v40_v41 = vadd.f32 1e-05, %v38_v40 }
 0x12c   :  { %434 = vrsqrt.f32 %v40_v41 }
 0x132   :  { %v433_v42 = vpop.eup %432 }
 0x133   :  { %v43_v43 = vmul.f32 %v433_v42, %v484_v9 }
 0x135   :  { %v51_v47 = vmul.f32 %v334_v44, %v43_v43 }
 0x136   :  { %v435_v45 = vpop.eup %434 }
 0x137   :  { %v44_v46 = vmul.f32 %v435_v45, %v488_v13  ;;  %v59_v50 = vadd.f32 %v335_v48, %v51_v47 }
 0x139   :  { %v52_v49 = vmul.f32 %v334_v44, %v44_v46 }
 0x13b   :  { %v60_v51 = vadd.f32 %v335_v48, %v52_v49 }
 0x13d   :  { %v61_v52 = vpack.c.bf16 %v60_v51, %v59_v50 }
 0x13f   :  { %255 = vmatmul.mubr.bf16.vlgmr.msra.gmra.mrb[0].mxu0 %v61_v52  ;;  %394 = vmatmul.mubr.bf16.vlgmr.msra.gmra.mrb[0].mxu1 %v61_v52 }
 0x212   :  { %v256_v53 = vpop.f32.mrb[0].mxu0  ;;  %v299_v54 = vpop.f32.mrb[0].mxu1 }
 0x213   :  { %v365_v55 = vpack.c.bf16 %v299_v54, %v299_v54  ;;  %v258_v56 = vpop.f32.mrb[1].mxu0  ;;  %v395_v57 = vpop.f32.mrb[1].mxu1 }
 0x214   :  { %v364_v58 = vpack.c.bf16 %v258_v56, %v256_v53  ;;  %v260_v59 = vpop.f32.mrb[2].mxu0  ;;  %v302_v60 = vpop.f32.mrb[2].mxu1 }
 0x215   :  { %327 = vst [vmem:[%s583_s4 + $0x8] sm:$0xf] %v365_v55  ;;  %v367_v61 = vpack.c.bf16 %v302_v60, %v302_v60  ;;  %v262_v62 = vpop.f32.mrb[3].mxu0  ;;  %v396_v63 = vpop.f32.mrb[3].mxu1 }
 0x216   :  { %326 = vst [vmem:[%s583_s4] sm:$0xff] %v364_v58  ;;  %v366_v0 = vpack.c.bf16 %v262_v62, %v260_v59 }
 0x217   :  { %329 = vst [vmem:[%s583_s4 + $0x14] sm:$0xf] %v367_v61 }
 0x218   :  { %328 = vst [vmem:[%s583_s4 + $0xc] sm:$0xff] %v366_v0 }

// kernel: transformer_forward.7
= control target key start
LH: loop header
LB: loop body
LE: loop exit
PB: predicated region body
PF: predicated region fallthrough
CT: control target
= control target key end

     0   :  { %s1335_s6 = smov 0   ;;  %s1518_s0 = inlined_call_operand.vmem [shape: bf16[2,8,384], index: 0, kind: input, shape index: {}]   ;;  %s1519_s1 = inlined_call_operand.vmem [shape: bf16[2,8,128], index: 1, kind: output, shape index: {}]  }
   0x1 LB: > { %s1101_s7 = sadd.s32 4294967295, %s1314_s6   ;;  %p1105_p0 = scmp.ge.s32.totalorder %s1314_s6, 1  ;;  %s1314_s6 = sphi %s1335_s6, %s11_s6  }
   0x2   : > { %p87_p1 = scmp.lt.s32.totalorder %s1314_s6, 3 }
   0x4   : > { %p88_p2 = pnand %p1105_p0, %p87_p1 }
   0x5   : > { %p106_p3 = scmp.lt.s32.totalorder (!%p88_p2), %s1101_s7, 1  ;;  %v1316_v0 = vmov (!%p88_p2), 0.0   ;;  %vm1317_vm0 = vmmov (!%p88_p2), 0   ;;  %vm124_vm1 = vcmask (!%p88_p2), 130048   ;;  %s1318_s12 = smov (!%p88_p2), 112   ;;  %vm171_vm2 = vcmask (!%p88_p2), 64512  }
   0x6   : > { %91 = sbr.rel (%p88_p2) target bundleno = 1198 (0x4ae), region = 24  ;;  %1160 = vmatprep.subr.bf16.mxu0 (!%p88_p2), %v1316_v0  ;;  %1162 = vmatprep.mubr.msk.bf16.mxu0 (!%p88_p2), %vm1317_vm0, %v1316_v0  ;;  %s1319_s13 = smov (!%p88_p2), 96   ;;  %vm185_vm3 = vcmask (!%p88_p2), 1043456   ;;  %vm1034_vm4 = vcmask (!%p88_p2), 261120   ;;  %vm1036_vm5 = vcmask (!%p88_p2), 392192   ;;  %vm1038_vm6 = vcmask (!%p88_p2), 523264  }
   0x7   : > { %1166 = vmatprep.subr.bf16.mxu1 (!%p88_p2), %v1316_v0  ;;  %1168 = vmatprep.mubr.msk.bf16.mxu1 (!%p88_p2), %vm1317_vm0, %v1316_v0  ;;  %s1320_s14 = smov (!%p88_p2), 80   ;;  %s1321_s15 = smov (!%p88_p2), 64   ;;  %vm1040_vm7 = vcmask (!%p88_p2), 654336   ;;  %vm1042_vm8 = vcmask (!%p88_p2), 785408   ;;  %vm1044_vm9 = vcmask (!%p88_p2), 916480  }
   0x8   : > { %s1322_s16 = smov (!%p88_p2), 48   ;;  %s1323_s17 = smov (!%p88_p2), 32  }
   0x9   : > { %s1324_s18 = smov (!%p88_p2), 16  }
   0xd   : > { %s1521_s7 = smov (!%p106_p3, %s1101_s7), 1 }
   0xe   : > { %s1256_s8 = smul.u32 12, %s1521_s7  ;;  %s1107_s19 = sshll.u32 %s1521_s7, 2 }
   0xf   : > { %s114_s22 = scalar_lea.vmem %s1519_s1, %s1107_s19 }
  0x10   : > { %s1355_s11 = scalar_lea.vmem %s1518_s0, %s1256_s8 }
  0x11   : > { %v116_v1 = vld [vmem:[%s1355_s11] sm:$0xff]  ;;  %v117_v12 = vld [vmem:[%s1355_s11 + $0x8] sm:$0xf] }
  0x12   : > { %v1108_v2 = vcombine.high %v116_v1, %v116_v1  ;;  %v118_v3 = vunpack.c.l.bf16 %v116_v1  ;;  %v187_v13 = vsel %vm185_vm3, %v117_v12, 0  ;;  %v1376_v14 = vcombine.low %v117_v12, %v117_v12 }
  0x13   : > { %1167 = vmatpush3.bf16.msra.mxu1 %v187_v13 }
  0x14   : > { %v129_v4 = vsel %vm124_vm1, %v1108_v2, 0  ;;  %v119_v5 = vmul.f32 0.088388346, %v118_v3  ;;  %1172 = vmatprep.subr.bf16.mxu1 %v1316_v0 }
  0x15   : > { %1161 = vmatpush3.bf16.xpose.msra.mxu0 %v129_v4 }
  0x16   : > { %1178 = vmatprep.subr.bf16.mxu0 %v1316_v0  ;;  %v120_v6 = vpack.c.bf16 %v119_v5, %v119_v5 }
  0x18   : > { %232 = vrot.lane.b32.xlu1 %v120_v6, %s1318_s12 }
  0x1c   : > { %1163 = vmatmul.mubr.msk.bf16.vlgmr.msra.gmra.mrb[0].mxu0 %vm124_vm1, %v120_v6  ;;  %347 = vrot.lane.b32.xlu1 %v1108_v2, %s1319_s13 }
  0x1d   : > { %1180 = vmatprep.mubr.msk.bf16.mxu0 %vm1317_vm0, %v1316_v0 }
  0x20   : > { %345 = vrot.lane.b32.xlu1 %v120_v6, %s1319_s13 }
  0x24   : > { %457 = vrot.lane.b32.xlu1 %v1108_v2, %s1320_s14 }
  0x28   : > { %455 = vrot.lane.b32.xlu1 %v120_v6, %s1320_s14 }
  0x2c   : > { %567 = vrot.lane.b32.xlu1 %v1108_v2, %s1321_s15 }
  0x30   : > { %565 = vrot.lane.b32.xlu1 %v120_v6, %s1321_s15 }
  0x34   : > { %675 = vrot.lane.b32.xlu1 %v120_v6, %s1322_s16 }
  0x38   : > { %785 = vrot.lane.b32.xlu1 %v120_v6, %s1323_s17 }
  0x3c   : > { %895 = vrot.lane.b32.xlu1 %v120_v6, %s1324_s18 }
  0x40   : > { %295 = vrot.lane.b32.xlu1 %v1376_v14, %s1318_s12 }
  0x8a   : > { %v233_v18 = vpop.permute.xlu1 %232 }
  0x8e   : > { %v348_v23 = vpop.permute.xlu1 %347 }
  0x8f   : > { %v353_v25 = vsel %vm124_vm1, %v348_v23, 0 }
  0x92   : > { %v346_v24 = vpop.permute.xlu1 %345 }
  0x96   : > { %v458_v26 = vpop.permute.xlu1 %457 }
  0x97   : > { %v463_v28 = vsel %vm124_vm1, %v458_v26, 0 }
  0x9a   : > { %v456_v27 = vpop.permute.xlu1 %455 }
  0x9e   : > { %v568_v29 = vpop.permute.xlu1 %567 }
  0x9f   : > { %v573_v30 = vsel %vm124_vm1, %v568_v29, 0 }
  0xa2   : > { %v566_v32 = vpop.permute.xlu1 %565 }
  0xa6   : > { %v676_v35 = vpop.permute.xlu1 %675 }
  0xaa   : > { %v786_v38 = vpop.permute.xlu1 %785 }
  0xae   : > { %v896_v40 = vpop.permute.xlu1 %895 }
  0xb2   : > { %v296_v41 = vpop.permute.xlu1 %295 }
  0xb3   : > { %v301_v42 = vsel %vm185_vm3, %v296_v41, 0 }
  0xb4   : > { %1179 = vmatpush3.bf16.msra.mxu0 %v301_v42 }
  0xb5   : > { %1190 = vmatprep.subr.bf16.mxu0 %v1316_v0 }
  0xef   : > { %v165_v7 = vpop.f32.mrb[0].mxu0 }
  0xf0   : > { %v1164_v8 = vpop.f32.mrb[1].mxu0  ;;  %v172_v9 = vsel %vm171_vm2, %v165_v7, -inf }
  0xf1   : > { %173 = vmax.xlane.f32.xlu0 %v172_v9  ;;  %v168_v10 = vpop.f32.mrb[2].mxu0 }
  0xf2   : > { %v1165_v11 = vpop.f32.mrb[3].mxu0 }
 0x107   : > { %234 = vrot.lane.b32.xlu0 %v1108_v2, %s1318_s12 }
 0x10b   : > { %677 = vrot.lane.b32.xlu0 %v1108_v2, %s1322_s16 }
 0x10f   : > { %787 = vrot.lane.b32.xlu0 %v1108_v2, %s1323_s17 }
 0x113   : > { %897 = vrot.lane.b32.xlu0 %v1108_v2, %s1324_s18 }
 0x117   : > { %405 = vrot.lane.b32.xlu0 %v1376_v14, %s1319_s13 }
 0x17e   : > { %v174_v15 = vpop.xlane.xlu0 %173 }
 0x17f   : > { %v175_v16 = vsub.f32 %v165_v7, %v174_v15 }
 0x181   : > { %v176_v17 = vmul.f32 1.442695, %v175_v16 }
 0x182   : > { %v235_v19 = vpop.permute.xlu0 %234 }
 0x183   : > { %1276 = vpow2.f32 %v176_v17  ;;  %v240_v21 = vsel %vm124_vm1, %v235_v19, 0 }
 0x186   : > { %v678_v31 = vpop.permute.xlu0 %677 }
 0x187   : > { %v683_v33 = vsel %vm124_vm1, %v678_v31, 0 }
 0x18a   : > { %v788_v34 = vpop.permute.xlu0 %787 }
 0x18b   : > { %v793_v36 = vsel %vm124_vm1, %v788_v34, 0 }
 0x18d   : > { %v1387_v20 = vpop.eup %1276 }
 0x18e   : > { %v181_v22 = vpack.c.bf16 %v1387_v20, %v1387_v20  ;;  %v898_v37 = vpop.permute.xlu0 %897 }
 0x18f   : > { %v903_v39 = vsel %vm124_vm1, %v898_v37, 0 }
 0x190   : > { %1169 = vmatmul.mubr.msk.bf16.vlgmr.msra.gmra.mrb[0].mxu1 %vm171_vm2, %v181_v22 }
 0x191   : > { %1173 = vmatpush3.bf16.xpose.msra.mxu1 %v240_v21  ;;  %1174 = vmatprep.mubr.msk.bf16.mxu1 %vm1317_vm0, %v1316_v0 }
 0x192   : > { %1184 = vmatprep.subr.bf16.mxu1 %v1316_v0  ;;  %v406_v21 = vpop.permute.xlu0 %405 }
 0x193   : > { %v411_v31 = vsel %vm185_vm3, %v406_v21, 0 }
 0x198   : > { %1175 = vmatmul.mubr.msk.bf16.vlgmr.msra.gmra.mrb[4].mxu1 %vm124_vm1, %v233_v18 }
 0x199   : > { %1185 = vmatpush3.bf16.xpose.msra.mxu1 %v353_v25  ;;  %1186 = vmatprep.mubr.msk.bf16.mxu1 %vm1317_vm0, %v1316_v0 }
 0x19a   : > { %1196 = vmatprep.subr.bf16.mxu1 %v1316_v0 }
 0x1a0   : > { %1187 = vmatmul.mubr.msk.bf16.vlgmr.msra.gmra.mrb[8].mxu1 %vm124_vm1, %v346_v24 }
 0x1a1   : > { %1197 = vmatpush3.bf16.xpose.msra.mxu1 %v463_v28  ;;  %1198 = vmatprep.mubr.msk.bf16.mxu1 %vm1317_vm0, %v1316_v0 }
 0x1a2   : > { %1208 = vmatprep.subr.bf16.mxu1 %v1316_v0 }
 0x1a8   : > { %1199 = vmatmul.mubr.msk.bf16.vlgmr.msra.gmra.mrb[12].mxu1 %vm124_vm1, %v456_v27 }
 0x1a9   : > { %1209 = vmatpush3.bf16.xpose.msra.mxu1 %v573_v30  ;;  %1210 = vmatprep.mubr.msk.bf16.mxu1 %vm1317_vm0, %v1316_v0 }
 0x1aa   : > { %1220 = vmatprep.subr.bf16.mxu1 %v1316_v0 }
 0x1b0   : > { %1211 = vmatmul.mubr.msk.bf16.vlgmr.msra.gmra.mrb[16].mxu1 %vm124_vm1, %v566_v32 }
 0x1b1   : > { %1221 = vmatpush3.bf16.xpose.msra.mxu1 %v683_v33  ;;  %1222 = vmatprep.mubr.msk.bf16.mxu1 %vm1317_vm0, %v1316_v0 }
 0x1b2   : > { %1232 = vmatprep.subr.bf16.mxu1 %v1316_v0 }
 0x1b8   : > { %1223 = vmatmul.mubr.msk.bf16.vlgmr.msra.gmra.mrb[20].mxu1 %vm124_vm1, %v676_v35 }
 0x1b9   : > { %1233 = vmatpush3.bf16.xpose.msra.mxu1 %v793_v36  ;;  %1234 = vmatprep.mubr.msk.bf16.mxu1 %vm1317_vm0, %v1316_v0 }
 0x1ba   : > { %1244 = vmatprep.subr.bf16.mxu1 %v1316_v0 }
 0x1c0   : > { %1235 = vmatmul.mubr.msk.bf16.vlgmr.msra.gmra.mrb[24].mxu1 %vm124_vm1, %v786_v38 }
 0x1c1   : > { %1245 = vmatpush3.bf16.xpose.msra.mxu1 %v903_v39  ;;  %1246 = vmatprep.mubr.msk.bf16.mxu1 %vm1317_vm0, %v1316_v0 }
 0x1c8   : > { %1247 = vmatmul.mubr.msk.bf16.vlgmr.msra.gmra.mrb[28].mxu1 %vm124_vm1, %v896_v40 }
 0x263   : > { %v1428_v43 = vpop.f32.mrb[0].mxu1 }
 0x264   : > { %v1170_v44 = vpop.f32.mrb[1].mxu1 }
 0x265   : > { %v226_v45 = vpop.f32.mrb[2].mxu1 }
 0x266   : > { %v1171_v46 = vpop.f32.mrb[3].mxu1 }
 0x26b   : > { %v276_v47 = vpop.f32.mrb[4].mxu1 }
 0x26c   : > { %v1176_v48 = vpop.f32.mrb[5].mxu1  ;;  %v282_v49 = vsel %vm171_vm2, %v276_v47, -inf }
 0x26d   : > { %283 = vmax.xlane.f32.xlu0 %v282_v49  ;;  %v279_v50 = vpop.f32.mrb[6].mxu1 }
 0x26e   : > { %v1177_v51 = vpop.f32.mrb[7].mxu1 }
 0x273   : > { %v389_v52 = vpop.f32.mrb[8].mxu1 }
 0x274   : > { %v395_v53 = vsel %vm171_vm2, %v389_v52, -inf  ;;  %v1188_v54 = vpop.f32.mrb[9].mxu1 }
 0x275   : > { %396 = vmax.xlane.f32.xlu1 %v395_v53  ;;  %v392_v55 = vpop.f32.mrb[10].mxu1 }
 0x276   : > { %v1189_v56 = vpop.f32.mrb[11].mxu1 }
 0x27b   : > { %v1432_v57 = vpop.f32.mrb[12].mxu1 }
 0x27c   : > { %v1200_v58 = vpop.f32.mrb[13].mxu1  ;;  %v505_v15 = vsel %vm171_vm2, %v1432_v57, -inf }
 0x27d   : > { %v502_v59 = vpop.f32.mrb[14].mxu1 }
 0x27e   : > { %v1201_v60 = vpop.f32.mrb[15].mxu1 }
 0x283   : > { %515 = vrot.lane.b32.xlu0 %v1376_v14, %s1320_s14  ;;  %v1436_v61 = vpop.f32.mrb[16].mxu1 }
 0x284   : > { %v1212_v62 = vpop.f32.mrb[17].mxu1  ;;  %v615_v16 = vsel %vm171_vm2, %v1436_v61, -inf }
 0x285   : > { %v612_v63 = vpop.f32.mrb[18].mxu1 }
 0x286   : > { %625 = vrot.lane.b32.xlu1 %v1376_v14, %s1321_s15  ;;  %v1213_v1 = vpop.f32.mrb[19].mxu1 }
 0x28b   : > { %v1440_v2 = vpop.f32.mrb[20].mxu1 }
 0x28c   : > { %v1224_v3 = vpop.f32.mrb[21].mxu1  ;;  %v725_v17 = vsel %vm171_vm2, %v1440_v2, -inf }
 0x28d   : > { %v722_v4 = vpop.f32.mrb[22].mxu1 }
 0x28e   : > { %v1225_v5 = vpop.f32.mrb[23].mxu1  ;;  %v178_v4 = vsel %vm171_vm2, %v1387_v20, 0.0 }
 0x293   : > { %v829_v6 = vpop.f32.mrb[24].mxu1 }
 0x294   : > { %v1236_v7 = vpop.f32.mrb[25].mxu1  ;;  %v835_v18 = vsel %vm171_vm2, %v829_v6, -inf }
 0x295   : > { %v832_v8 = vpop.f32.mrb[26].mxu1 }
 0x296   : > { %v1237_v9 = vpop.f32.mrb[27].mxu1 }
 0x29b   : > { %v1442_v10 = vpop.f32.mrb[28].mxu1 }
 0x29c   : > { %v1248_v11 = vpop.f32.mrb[29].mxu1  ;;  %v945_v19 = vsel %vm171_vm2, %v1442_v10, -inf }
 0x29d   : > { %v942_v12 = vpop.f32.mrb[30].mxu1 }
 0x29e   : > { %v1249_v13 = vpop.f32.mrb[31].mxu1 }
 0x2a2   : > { %506 = vmax.xlane.f32.xlu0 %v505_v15 }
 0x2a6   : > { %616 = vmax.xlane.f32.xlu0 %v615_v16 }
 0x2aa   : > { %726 = vmax.xlane.f32.xlu0 %v725_v17  ;;  %836 = vmax.xlane.f32.xlu1 %v835_v18 }
 0x2ae   : > { %946 = vmax.xlane.f32.xlu0 %v945_v19 }
 0x2bb   : > { %845 = vrot.lane.b32.xlu1 %v1376_v14, %s1323_s17 }
 0x2bf   : > { %955 = vrot.lane.b32.xlu1 %v1376_v14, %s1324_s18 }
 0x2c4   : > { %735 = vrot.lane.b32.xlu0 %v1376_v14, %s1322_s16 }
 0x2fa   : > { %v284_v22 = vpop.xlane.xlu0 %283 }
 0x2fb   : > { %v285_v23 = vsub.f32 %v276_v47, %v284_v22 }
 0x2fd   : > { %v286_v24 = vmul.f32 1.442695, %v285_v23 }
 0x2fe   : > { %v516_v32 = vpop.permute.xlu0 %515 }
 0x2ff   : > { %1278 = vpow2.f32 %v286_v24  ;;  %v521_v35 = vsel %vm185_vm3, %v516_v32, 0 }
 0x302   : > { %v397_v25 = vpop.xlane.xlu1 %396 }
 0x303   : > { %v398_v26 = vsub.f32 %v389_v52, %v397_v25 }
 0x305   : > { %v399_v27 = vmul.f32 1.442695, %v398_v26 }
 0x306   : > { %v626_v39 = vpop.permute.xlu1 %625 }
 0x307   : > { %1280 = vpow2.f32 %v399_v27  ;;  %v631_v56 = vsel %vm185_vm3, %v626_v39, 0 }
 0x309   : > { %v1279_v28 = vpop.eup %1278 }
 0x30a   : > { %v288_v29 = vsel %vm171_vm2, %v1279_v28, 0.0  ;;  %v291_v30 = vpack.c.bf16 %v1279_v28, %v1279_v28 }
 0x30b   : > { %289 = vadd.xlane.f32.xlu1 %v288_v29 }
 0x30c   : > { %1181 = vmatmul.mubr.msk.bf16.vlgmr.msra.gmra.mrb[4].mxu0 %vm171_vm2, %v291_v30 }
 0x30d   : > { %1191 = vmatpush3.bf16.msra.mxu0 %v411_v31  ;;  %1192 = vmatprep.mubr.msk.bf16.mxu0 %vm1317_vm0, %v1316_v0 }
 0x30e   : > { %1202 = vmatprep.subr.bf16.mxu0 %v1316_v0 }
 0x311   : > { %v1281_v14 = vpop.eup %1280 }
 0x312   : > { %v401_v33 = vsel %vm171_vm2, %v1281_v14, 0.0  ;;  %v404_v34 = vpack.c.bf16 %v1281_v14, %v1281_v14 }
 0x313   : > { %402 = vadd.xlane.f32.xlu0 %v401_v33 }
 0x314   : > { %1193 = vmatmul.mubr.msk.bf16.vlgmr.msra.gmra.mrb[8].mxu0 %vm171_vm2, %v404_v34 }
 0x315   : > { %1203 = vmatpush3.bf16.msra.mxu0 %v521_v35  ;;  %1204 = vmatprep.mubr.msk.bf16.mxu0 %vm1317_vm0, %v1316_v0 }
 0x316   : > { %1214 = vmatprep.subr.bf16.mxu0 %v1316_v0 }
 0x32f   : > { %v507_v36 = vpop.xlane.xlu0 %506 }
 0x330   : > { %v508_v37 = vsub.f32 %v1432_v57, %v507_v36 }
 0x332   : > { %v509_v38 = vmul.f32 1.442695, %v508_v37 }
 0x333   : > { %v617_v40 = vpop.xlane.xlu0 %616 }
 0x334   : > { %1282 = vpow2.f32 %v509_v38  ;;  %v618_v41 = vsub.f32 %v1436_v61, %v617_v40 }
 0x336   : > { %v619_v42 = vmul.f32 1.442695, %v618_v41 }
 0x337   : > { %v837_v44 = vpop.xlane.xlu1 %836  ;;  %v727_v45 = vpop.xlane.xlu0 %726 }
 0x338   : > { %1284 = vpow2.f32 %v619_v42  ;;  %v838_v46 = vsub.f32 %v829_v6, %v837_v44  ;;  %v728_v47 = vsub.f32 %v1440_v2, %v727_v45 }
 0x33a   : > { %v839_v48 = vmul.f32 1.442695, %v838_v46  ;;  %v729_v49 = vmul.f32 1.442695, %v728_v47 }
 0x33b   : > { %v947_v50 = vpop.xlane.xlu0 %946  ;;  %v846_v6 = vpop.permute.xlu1 %845 }
 0x33c   : > { %1286 = vpow2.f32 %v839_v48  ;;  %v948_v51 = vsub.f32 %v1442_v10, %v947_v50  ;;  %v851_v7 = vsel %vm185_vm3, %v846_v6, 0 }
 0x33d   : > { %1288 = vpow2.f32 %v729_v49 }
 0x33e   : > { %v1283_v52 = vpop.eup %1282  ;;  %v949_v53 = vmul.f32 1.442695, %v948_v51 }
 0x33f   : > { %v511_v54 = vsel %vm171_vm2, %v1283_v52, 0.0  ;;  %v514_v55 = vpack.c.bf16 %v1283_v52, %v1283_v52  ;;  %v736_v59 = vpop.permute.xlu0 %735  ;;  %v956_v9 = vpop.permute.xlu1 %955 }
 0x340   : > { %1290 = vpow2.f32 %v949_v53  ;;  %512 = vadd.xlane.f32.xlu1 %v511_v54  ;;  %v741_v62 = vsel %vm185_vm3, %v736_v59, 0  ;;  %v961_v20 = vsel %vm185_vm3, %v956_v9, 0 }
 0x341   : > { %1205 = vmatmul.mubr.msk.bf16.vlgmr.msra.gmra.mrb[12].mxu0 %vm171_vm2, %v514_v55 }
 0x342   : > { %v1285_v57 = vpop.eup %1284  ;;  %1215 = vmatpush3.bf16.msra.mxu0 %v631_v56  ;;  %1216 = vmatprep.mubr.msk.bf16.mxu0 %vm1317_vm0, %v1316_v0 }
 0x343   : > { %v621_v58 = vsel %vm171_vm2, %v1285_v57, 0.0  ;;  %1226 = vmatprep.subr.bf16.mxu0 %v1316_v0  ;;  %v624_v1 = vpack.c.bf16 %v1285_v57, %v1285_v57 }
 0x344   : > { %622 = vadd.xlane.f32.xlu0 %v621_v58 }
 0x346   : > { %v1287_v60 = vpop.eup %1286 }
 0x347   : > { %v1289_v61 = vpop.eup %1288  ;;  %v841_v63 = vsel %vm171_vm2, %v1287_v60, 0.0  ;;  %v844_v10 = vpack.c.bf16 %v1287_v60, %v1287_v60 }
 0x348   : > { %842 = vadd.xlane.f32.xlu0 %v841_v63  ;;  %v731_v2 = vsel %vm171_vm2, %v1289_v61, 0.0  ;;  %v734_v8 = vpack.c.bf16 %v1289_v61, %v1289_v61 }
 0x349   : > { %732 = vadd.xlane.f32.xlu1 %v731_v2  ;;  %1217 = vmatmul.mubr.msk.bf16.vlgmr.msra.gmra.mrb[16].mxu0 %vm171_vm2, %v624_v1 }
 0x34a   : > { %v1291_v3 = vpop.eup %1290  ;;  %1227 = vmatpush3.bf16.msra.mxu0 %v741_v62  ;;  %1228 = vmatprep.mubr.msk.bf16.mxu0 %vm1317_vm0, %v1316_v0 }
 0x34b   : > { %v951_v5 = vsel %vm171_vm2, %v1291_v3, 0.0  ;;  %1238 = vmatprep.subr.bf16.mxu0 %v1316_v0  ;;  %v954_v11 = vpack.c.bf16 %v1291_v3, %v1291_v3 }
 0x34c   : > { %179 = vadd.xlane.f32.xlu0 %v178_v4 }
 0x34d   : > { %952 = vadd.xlane.f32.xlu1 %v951_v5 }
 0x351   : > { %1229 = vmatmul.mubr.msk.bf16.vlgmr.msra.gmra.mrb[20].mxu0 %vm171_vm2, %v734_v8 }
 0x352   : > { %1239 = vmatpush3.bf16.msra.mxu0 %v851_v7  ;;  %1240 = vmatprep.mubr.msk.bf16.mxu0 %vm1317_vm0, %v1316_v0 }
 0x353   : > { %1250 = vmatprep.subr.bf16.mxu0 %v1316_v0 }
 0x359   : > { %1241 = vmatmul.mubr.msk.bf16.vlgmr.msra.gmra.mrb[24].mxu0 %vm171_vm2, %v844_v10 }
 0x35a   : > { %1251 = vmatpush3.bf16.msra.mxu0 %v961_v20  ;;  %1252 = vmatprep.mubr.msk.bf16.mxu0 %vm1317_vm0, %v1316_v0 }
 0x361   : > { %1253 = vmatmul.mubr.msk.bf16.vlgmr.msra.gmra.mrb[28].mxu0 %vm171_vm2, %v954_v11 }
 0x398   : > { %v290_v12 = vpop.xlane.xlu1 %289 }
 0x399   : > { %1292 = vrcp.f32 %v290_v12 }
 0x3a0   : > { %v403_v13 = vpop.xlane.xlu0 %402 }
 0x3a1   : > { %1294 = vrcp.f32 %v403_v13 }
 0x3a3   : > { %v1293_v15 = vpop.eup %1292 }
 0x3ab   : > { %v1295_v22 = vpop.eup %1294 }
 0x3cd   : > { %v513_v27 = vpop.xlane.xlu1 %512 }
 0x3ce   : > { %1296 = vrcp.f32 %v513_v27 }
 0x3d1   : > { %v623_v28 = vpop.xlane.xlu0 %622 }
 0x3d2   : > { %1298 = vrcp.f32 %v623_v28 }
 0x3d5   : > { %v843_v40 = vpop.xlane.xlu0 %842 }
 0x3d6   : > { %v733_v33 = vpop.xlane.xlu1 %732 }
 0x3d7   : > { %1300 = vrcp.f32 %v733_v33 }
 0x3d8   : > { %v1297_v29 = vpop.eup %1296  ;;  %1302 = vrcp.f32 %v843_v40 }
 0x3d9   : > { %v180_v62 = vpop.xlane.xlu0 %179 }
 0x3da   : > { %v953_v48 = vpop.xlane.xlu1 %952 }
 0x3db   : > { %1304 = vrcp.f32 %v953_v48 }
 0x3dc   : > { %v1299_v35 = vpop.eup %1298  ;;  %1306 = vrcp.f32 %v180_v62 }
 0x3df   : > { %v337_v16 = vpop.f32.mrb[4].mxu0 }
 0x3e0   : > { %v344_v17 = vmul.f32 %v1293_v15, %v337_v16  ;;  %v1182_v18 = vpop.f32.mrb[5].mxu0 }
 0x3e1   : > { %v340_v19 = vpop.f32.mrb[6].mxu0  ;;  %v1301_v42 = vpop.eup %1300 }
 0x3e2   : > { %1006 = vrot.lane.b32.xlu1 %v344_v17, %s1324_s18  ;;  %v1183_v21 = vpop.f32.mrb[7].mxu0  ;;  %v1303_v50 = vpop.eup %1302 }
 0x3e5   : > { %v1305_v56 = vpop.eup %1304 }
 0x3e6   : > { %v1307_v2 = vpop.eup %1306 }
 0x3e7   : > { %v447_v23 = vpop.f32.mrb[8].mxu0  ;;  %v230_v4 = vmul.f32 %v1307_v2, %v1428_v43 }
 0x3e8   : > { %v454_v24 = vmul.f32 %v1295_v22, %v447_v23  ;;  %v1194_v25 = vpop.f32.mrb[9].mxu0 }
 0x3e9   : > { %v450_v0 = vpop.f32.mrb[10].mxu0 }
 0x3ea   : > { %1010 = vrot.lane.b32.xlu0 %v454_v24, %s1323_s17  ;;  %v1195_v26 = vpop.f32.mrb[11].mxu0 }
 0x414   : > { %v557_v30 = vpop.f32.mrb[12].mxu0 }
 0x415   : > { %v564_v31 = vmul.f32 %v1297_v29, %v557_v30  ;;  %v1206_v14 = vpop.f32.mrb[13].mxu0 }
 0x416   : > { %v560_v32 = vpop.f32.mrb[14].mxu0 }
 0x417   : > { %1014 = vrot.lane.b32.xlu1 %v564_v31, %s1322_s16  ;;  %v1207_v34 = vpop.f32.mrb[15].mxu0 }
 0x41c   : > { %v667_v36 = vpop.f32.mrb[16].mxu0 }
 0x41d   : > { %v674_v37 = vmul.f32 %v1299_v35, %v667_v36  ;;  %v1218_v38 = vpop.f32.mrb[17].mxu0 }
 0x41e   : > { %v670_v39 = vpop.f32.mrb[18].mxu0 }
 0x41f   : > { %1018 = vrot.lane.b32.xlu1 %v674_v37, %s1321_s15  ;;  %v1219_v41 = vpop.f32.mrb[19].mxu0 }
 0x424   : > { %v777_v44 = vpop.f32.mrb[20].mxu0 }
 0x425   : > { %v784_v45 = vmul.f32 %v1301_v42, %v777_v44  ;;  %v1230_v46 = vpop.f32.mrb[21].mxu0 }
 0x426   : > { %v780_v47 = vpop.f32.mrb[22].mxu0 }
 0x427   : > { %1022 = vrot.lane.b32.xlu0 %v784_v45, %s1320_s14  ;;  %v1231_v49 = vpop.f32.mrb[23].mxu0 }
 0x42c   : > { %v887_v51 = vpop.f32.mrb[24].mxu0 }
 0x42d   : > { %v894_v52 = vmul.f32 %v1303_v50, %v887_v51  ;;  %v1242_v53 = vpop.f32.mrb[25].mxu0 }
 0x42e   : > { %v890_v54 = vpop.f32.mrb[26].mxu0 }
 0x42f   : > { %1026 = vrot.lane.b32.xlu1 %v894_v52, %s1319_s13  ;;  %v1243_v55 = vpop.f32.mrb[27].mxu0 }
 0x434   : > { %v997_v57 = vpop.f32.mrb[28].mxu0 }
 0x435   : > { %v1004_v58 = vmul.f32 %v1305_v56, %v997_v57  ;;  %v1254_v59 = vpop.f32.mrb[29].mxu0 }
 0x436   : > { %v1000_v60 = vpop.f32.mrb[30].mxu0 }
 0x437   : > { %1030 = vrot.lane.b32.xlu0 %v1004_v58, %s1318_s12  ;;  %v1255_v61 = vpop.f32.mrb[31].mxu0 }
 0x454   : > { %v1007_v63 = vpop.permute.xlu1 %1006 }
 0x455   : > { %v1033_v6 = vsel %vm124_vm1, %v230_v4, %v1007_v63 }
 0x45c   : > { %v1011_v3 = vpop.permute.xlu0 %1010 }
 0x45d   : > { %v1035_v7 = vsel %vm1034_vm4, %v1033_v6, %v1011_v3 }
 0x489   : > { %v1015_v1 = vpop.permute.xlu1 %1014 }
 0x48a   : > { %v1037_v9 = vsel %vm1036_vm5, %v1035_v7, %v1015_v1 }
 0x491   : > { %v1019_v5 = vpop.permute.xlu1 %1018 }
 0x492   : > { %v1039_v10 = vsel %vm1038_vm6, %v1037_v9, %v1019_v5 }
 0x499   : > { %v1023_v8 = vpop.permute.xlu0 %1022 }
 0x49a   : > { %v1041_v11 = vsel %vm1040_vm7, %v1039_v10, %v1023_v8 }
 0x4a1   : > { %v1027_v20 = vpop.permute.xlu1 %1026 }
 0x4a2   : > { %v1043_v12 = vsel %vm1042_vm8, %v1041_v11, %v1027_v20 }
 0x4a9   : > { %v1031_v13 = vpop.permute.xlu0 %1030 }
 0x4aa   : > { %v1045_v43 = vsel %vm1044_vm9, %v1043_v12, %v1031_v13 }
 0x4ab   : > { %v1046_v15 = vpack.c.bf16 %v1045_v43, %v1045_v43 }
 0x4ad   : > { %1047 = vst [vmem:[%s114_s22] sm:$0xf] %v1046_v15 }
 0x4ae PF: > { %s11_s6 = sadd.s32 1, %s1314_s6  }
 0x4af   : > { %p8_p4 = scmp.ge.s32.totalorder %s11_s6, 4  }
 0x4b1   :  { %10 = sbr.rel (!%p8_p4) target bundleno = 1 (0x1), region = 54 }

// kernel: transformer_forward.11
= control target key start
LH: loop header
LB: loop body
LE: loop exit
PB: predicated region body
PF: predicated region fallthrough
CT: control target
= control target key end

     0   :  { %v800_v1 = vmov 0.0   ;;  %vm801_vm0 = vmmov 0   ;;  %s1027_s0 = inlined_call_operand.vmem [shape: bf16[16,128], index: 0, kind: input, shape index: {}]   ;;  %s1028_s1 = inlined_call_operand.vmem [shape: bf16[128,128], index: 1, kind: input, shape index: {}]   ;;  %s1029_s2 = inlined_call_operand.vmem [shape: f32[1,128], index: 2, kind: input, shape index: {}]   ;;  %s1030_s3 = inlined_call_operand.vmem [shape: f32[16,128], index: 3, kind: input, shape index: {}]   ;;  %s1031_s4 = inlined_call_operand.vmem [shape: f32[1,128], index: 4, kind: input, shape index: {}]   ;;  %s1032_s5 = inlined_call_operand.vmem [shape: f32[1,128], index: 5, kind: input, shape index: {}]   ;;  %s1033_s6 = inlined_call_operand.vmem [shape: bf16[128,256], index: 6, kind: input, shape index: {}]   ;;  %s1034_s7 = inlined_call_operand.vmem [shape: f32[1,256], index: 7, kind: input, shape index: {}]   ;;  %s1035_s8 = inlined_call_operand.vmem [shape: bf16[256,128], index: 8, kind: input, shape index: {}]   ;;  %s1036_s9 = inlined_call_operand.vmem [shape: f32[1,128], index: 9, kind: input, shape index: {}]   ;;  %s1037_s10 = inlined_call_operand.hbm [shape: f32[16,128], index: 10, kind: output, shape index: {}]  }
   0x1   :  { %v715_v0 = vld [vmem:[%s1028_s1] sm:$0xff]   ;;  %689 = vmatprep.subr.bf16.mxu0 %v800_v1  ;;  %v716_v2 = vld [vmem:[%s1028_s1 + $0x8] sm:$0xff]   ;;  %705 = vmatprep.mubr.msk.bf16.mxu0 %vm801_vm0, %v800_v1  ;;  %v717_v3 = vld [vmem:[%s1028_s1 + $0x10] sm:$0xff]  }
   0x2   :  { %690 = vmatpush3.bf16.msra.mxu0 %v715_v0  ;;  %v718_v4 = vld [vmem:[%s1028_s1 + $0x18] sm:$0xff]   ;;  %v719_v5 = vld [vmem:[%s1028_s1 + $0x20] sm:$0xff]   ;;  %v720_v6 = vld [vmem:[%s1028_s1 + $0x28] sm:$0xff]  }
   0x3   :  { %691 = vmatprep.subr.bf16.mxu0 %v800_v1  ;;  %v721_v7 = vld [vmem:[%s1028_s1 + $0x30] sm:$0xff]  }
   0x6   :  { %692 = vmatpush3.bf16.msra.mxu0 %v716_v2 }
   0x7   :  { %693 = vmatprep.subr.bf16.mxu0 %v800_v1 }
   0xa   :  { %694 = vmatpush3.bf16.msra.mxu0 %v717_v3 }
   0xb   :  { %695 = vmatprep.subr.bf16.mxu0 %v800_v1 }
   0xe   :  { %696 = vmatpush3.bf16.msra.mxu0 %v718_v4 }
   0xf   :  { %697 = vmatprep.subr.bf16.mxu0 %v800_v1 }
  0x12   :  { %698 = vmatpush3.bf16.msra.mxu0 %v719_v5 }
  0x13   :  { %699 = vmatprep.subr.bf16.mxu0 %v800_v1 }
  0x16   :  { %700 = vmatpush3.bf16.msra.mxu0 %v720_v6 }
  0x17   :  { %701 = vmatprep.subr.bf16.mxu0 %v800_v1 }
  0x18   :  { %15 = vsyncpa [#allocation6], 0  ;;  %v722_v8 = vld [vmem:[%s1028_s1 + $0x38] sm:$0xff]   ;;  %v723_v9 = vld [vmem:[%s1027_s0] sm:$0xff]   ;;  %v802_v40 = vmov 0   ;;  %s803_s29 = smov [#allocation5]  }
  0x19   :  { %v613_v10 = vld [vmem:[%s1029_s2] ss:$0 sm:$0xff]  ;;  %v162_v19 = vld [vmem:[%s1030_s3 + $0x8] sm:$0xff]  ;;  %v727_v23 = vld [vmem:[%s1033_s6 + $0x14] ss:$8 sps:$4 sm:$0xff]   ;;  %353 = vmatprep.mubr.bf16.mxu1 %v802_v40  ;;  %s602_s30 = sshll.u32 %s803_s29, 4  ;;  %s603_s30 = int_to_ptr.vmem [resolvable:$true] %s602_s30 }
  0x1a   :  { %702 = vmatpush3.bf16.msra.mxu0 %v721_v7  ;;  %v161_v12 = vld [vmem:[%s1030_s3] sm:$0xff]  ;;  %v729_v32 = vld [vmem:[%s1033_s6 + $0x10] ss:$8 sps:$4 sm:$0xff]   ;;  %v733_v35 = vld [vmem:[%s1033_s6 + $0x34] ss:$8 sps:$4 sm:$0xff]   ;;  %s776_s11 = scalar_lea.vmem %s603_s30, 256  ;;  %p781_p1 = scmp.lt.s32.totalorder %s603_s30, %s603_s30 }
  0x1b   :  { %703 = vmatprep.subr.bf16.mxu0 %v800_v1  ;;  %v724_v21 = vld [vmem:[%s1033_s6 + $0x4] ss:$8 sps:$4 sm:$0xff]   ;;  %v726_v22 = vld [vmem:[%s1033_s6] ss:$8 sps:$4 sm:$0xff]   ;;  %v735_v36 = vld [vmem:[%s1033_s6 + $0x30] ss:$8 sps:$4 sm:$0xff]   ;;  %p777_p0 = scmp.ne.s32.totalorder %s603_s30, %s776_s11  ;;  %p782_p2 = scmp.lt.s32.totalorder %s776_s11, %s776_s11 }
  0x1c   :  { %321 = vmatprep.subr.bf16.mxu1 %v724_v21  ;;  %v730_v33 = vld [vmem:[%s1033_s6 + $0x24] ss:$8 sps:$4 sm:$0xff]   ;;  %v732_v34 = vld [vmem:[%s1033_s6 + $0x20] ss:$8 sps:$4 sm:$0xff]   ;;  %v739_v39 = vld [vmem:[%s1033_s6 + $0x54] ss:$8 sps:$4 sm:$0xff]  }
  0x1d   :  { %322 = vmatpush1.bf16.msra.mxu1 %v726_v22  ;;  %v736_v37 = vld [vmem:[%s1033_s6 + $0x44] ss:$8 sps:$4 sm:$0xff]   ;;  %v738_v38 = vld [vmem:[%s1033_s6 + $0x40] ss:$8 sps:$4 sm:$0xff]   ;;  %v741_v41 = vld [vmem:[%s1033_s6 + $0x50] ss:$8 sps:$4 sm:$0xff]   ;;  %p783_p3 = por %p782_p2, %p781_p1 }
  0x1e   :  { %704 = vmatpush3.bf16.msra.mxu0 %v722_v8  ;;  %323 = vmatprep.subr.bf16.mxu1 %v727_v23  ;;  %v742_v42 = vld [vmem:[%s1033_s6 + $0x64] ss:$8 sps:$4 sm:$0xff]   ;;  %v744_v43 = vld [vmem:[%s1033_s6 + $0x60] ss:$8 sps:$4 sm:$0xff]   ;;  %v745_v44 = vld [vmem:[%s1033_s6 + $0x74] ss:$8 sps:$4 sm:$0xff]  }
  0x1f   :  { %v747_v45 = vld [vmem:[%s1033_s6 + $0x70] ss:$8 sps:$4 sm:$0xff]   ;;  %v623_v54 = vld [vmem:[%s1031_s4] ss:$0 sm:$0xff]  ;;  %v750_v1 = vld [vmem:[%s1035_s8 + $0x48] sm:$0xff]   ;;  %p784_p4 = pnand %p783_p3, %p777_p0 }
  0x20   :  { %v624_v58 = vld [vmem:[%s1032_s5] ss:$0 sm:$0xff]  ;;  %v751_v2 = vld [vmem:[%s1035_s8 + $0x8] sm:$0xff]   ;;  %v752_v3 = vld [vmem:[%s1035_s8 + $0x50] sm:$0xff]  }
  0x21   :  { %706 = vmatmul.mubr.bf16.vlgmr.msra.gmra.mrb[0].mxu0 %v723_v9  ;;  %324 = vmatpush1.bf16.msra.mxu1 %v729_v32  ;;  %v748_v63 = vld [vmem:[%s1035_s8 + $0x40] sm:$0xff]   ;;  %v753_v4 = vld [vmem:[%s1035_s8 + $0x10] sm:$0xff]   ;;  %v754_v5 = vld [vmem:[%s1035_s8 + $0x58] sm:$0xff]  }
  0x22   :  { %325 = vmatprep.subr.bf16.mxu1 %v730_v33  ;;  %v749_v0 = vld [vmem:[%s1035_s8] sm:$0xff]   ;;  %667 = vmatprep.subr.bf16.mxu0 %v748_v63  ;;  %v755_v6 = vld [vmem:[%s1035_s8 + $0x18] sm:$0xff]   ;;  %v758_v9 = vld [vmem:[%s1035_s8 + $0x68] sm:$0xff]  }
  0x23   :  { %668 = vmatpush3.bf16.msra.mxu0 %v749_v0  ;;  %v756_v7 = vld [vmem:[%s1035_s8 + $0x60] sm:$0xff]  }
  0x24   :  { %669 = vmatprep.subr.bf16.mxu0 %v750_v1  ;;  %v757_v8 = vld [vmem:[%s1035_s8 + $0x20] sm:$0xff]  }
  0x25   :  { %326 = vmatpush1.bf16.msra.mxu1 %v732_v34 }
  0x26   :  { %327 = vmatprep.subr.bf16.mxu1 %v733_v35 }
  0x27   :  { %670 = vmatpush3.bf16.msra.mxu0 %v751_v2 }
  0x28   :  { %671 = vmatprep.subr.bf16.mxu0 %v752_v3 }
  0x29   :  { %328 = vmatpush1.bf16.msra.mxu1 %v735_v36 }
  0x2a   :  { %329 = vmatprep.subr.bf16.mxu1 %v736_v37 }
  0x2b   :  { %672 = vmatpush3.bf16.msra.mxu0 %v753_v4 }
  0x2c   :  { %673 = vmatprep.subr.bf16.mxu0 %v754_v5 }
  0x2d   :  { %330 = vmatpush1.bf16.msra.mxu1 %v738_v38 }
  0x2e   :  { %331 = vmatprep.subr.bf16.mxu1 %v739_v39 }
  0x2f   :  { %674 = vmatpush3.bf16.msra.mxu0 %v755_v6 }
  0x30   :  { %675 = vmatprep.subr.bf16.mxu0 %v756_v7 }
  0x31   :  { %332 = vmatpush1.bf16.msra.mxu1 %v741_v41 }
  0x32   :  { %333 = vmatprep.subr.bf16.mxu1 %v742_v42 }
  0x33   :  { %676 = vmatpush3.bf16.msra.mxu0 %v757_v8  ;;  %v657_v8 = vld [vmem:[%s1036_s9] ss:$0 sm:$0xff] }
  0x34   :  { %677 = vmatprep.subr.bf16.mxu0 %v758_v9 }
  0x35   :  { %334 = vmatpush1.bf16.msra.mxu1 %v744_v43 }
  0x36   :  { %335 = vmatprep.subr.bf16.mxu1 %v745_v44 }
  0x39   :  { %336 = vmatpush1.bf16.msra.mxu1 %v747_v45 }
  0xf4   :  { %v154_v11 = vpop.f32.mrb[0].mxu0 }
  0xf5   :  { %v155_v13 = vadd.f32 %v613_v10, %v154_v11  ;;  %v707_v14 = vpop.f32.mrb[1].mxu0  ;;  %v760_v11 = vld [vmem:[%s1035_s8 + $0x70] sm:$0xff]  }
  0xf6   :  { %v157_v15 = vpop.f32.mrb[2].mxu0  ;;  %v763_v14 = vld [vmem:[%s1035_s8 + $0x38] sm:$0xff]  }
  0xf7   :  { %v894_v16 = vadd.f32 %v161_v12, %v155_v13  ;;  %v158_v17 = vadd.f32 %v613_v10, %v157_v15  ;;  %v708_v18 = vpop.f32.mrb[3].mxu0  ;;  %v759_v10 = vld [vmem:[%s1035_s8 + $0x28] sm:$0xff]   ;;  %v761_v12 = vld [vmem:[%s1035_s8 + $0x30] sm:$0xff]   ;;  %v762_v13 = vld [vmem:[%s1035_s8 + $0x78] sm:$0xff]   ;;  %v231_v15 = vlaneseq }
  0xf8   :  { %678 = vmatpush3.bf16.msra.mxu0 %v759_v10 }
  0xf9   :  { %169 = vadd.xlane.f32.xlu0 %v894_v16  ;;  %v900_v20 = vadd.f32 %v162_v19, %v158_v17  ;;  %679 = vmatprep.subr.bf16.mxu0 %v760_v11  ;;  %v232_v17 = vshrl.u32 %v231_v15, 7  ;;  %v229_v19 = vld [vmem:[%s1034_s7] sm:$0x3] }
  0xfb   :  { %v233_v18 = vsub.s32 0, %v232_v17  ;;  %v237_v21 = vsub.s32 1, %v232_v17 }
  0xfc   :  { %680 = vmatpush3.bf16.msra.mxu0 %v761_v12 }
  0xfd   :  { %171 = vadd.xlane.f32.xlu0 %v900_v20  ;;  %681 = vmatprep.subr.bf16.mxu0 %v762_v13  ;;  %v234_v22 = vrot.slane %v229_v19, %v233_v18  ;;  %v238_v23 = vrot.slane %v229_v19, %v237_v21 }
 0x100   :  { %682 = vmatpush3.bf16.msra.mxu0 %v763_v14 }
 0x186   :  { %v170_v24 = vpop.xlane.xlu0 %169 }
 0x187   :  { %v174_v25 = vmul.f32 0.0078125, %v170_v24 }
 0x189   :  { %v176_v26 = vsub.f32 %v894_v16, %v174_v25 }
 0x18a   :  { %v172_v27 = vpop.xlane.xlu0 %171 }
 0x18b   :  { %v175_v28 = vmul.f32 0.0078125, %v172_v27  ;;  %v178_v29 = vmul.f32 %v176_v26, %v176_v26 }
 0x18d   :  { %v177_v30 = vsub.f32 %v900_v20, %v175_v28  ;;  %180 = vadd.xlane.f32.xlu1 %v178_v29 }
 0x18f   :  { %v179_v31 = vmul.f32 %v177_v30, %v177_v30 }
 0x191   :  { %182 = vadd.xlane.f32.xlu1 %v179_v31 }
 0x21a   :  { %v181_v46 = vpop.xlane.xlu1 %180 }
 0x21b   :  { %v184_v47 = vmul.f32 0.0078125, %v181_v46 }
 0x21d   :  { %v186_v48 = vadd.f32 1e-05, %v184_v47 }
 0x21e   :  { %v183_v49 = vpop.xlane.xlu1 %182 }
 0x21f   :  { %764 = vrsqrt.f32 %v186_v48  ;;  %v185_v50 = vmul.f32 0.0078125, %v183_v49 }
 0x221   :  { %v187_v51 = vadd.f32 1e-05, %v185_v50 }
 0x223   :  { %766 = vrsqrt.f32 %v187_v51 }
 0x229   :  { %v765_v52 = vpop.eup %764 }
 0x22a   :  { %v190_v53 = vmul.f32 %v765_v52, %v176_v26 }
 0x22c   :  { %v198_v57 = vmul.f32 %v623_v54, %v190_v53 }
 0x22d   :  { %v767_v55 = vpop.eup %766 }
 0x22e   :  { %v191_v56 = vmul.f32 %v767_v55, %v177_v30  ;;  %v206_v60 = vadd.f32 %v624_v58, %v198_v57 }
 0x230   :  { %v199_v59 = vmul.f32 %v623_v54, %v191_v56 }
 0x232   :  { %v207_v61 = vadd.f32 %v624_v58, %v199_v59 }
 0x234   :  { %v208_v62 = vpack.c.bf16 %v207_v61, %v206_v60 }
 0x236   :  { %354 = vmatmul.mubr.bf16.vlgmr.msra.gmra.mrb[0].mxu1 %v208_v62 }
 0x309   :  { %v355_v24 = vpop.f32.mrb[0].mxu1 }
 0x30a   :  { %v356_v25 = vadd.f32 %v355_v24, %v234_v22  ;;  %v357_v26 = vpop.f32.mrb[1].mxu1 }
 0x30b   :  { %v358_v27 = vadd.f32 %v357_v26, %v238_v23  ;;  %v359_v28 = vpop.f32.mrb[2].mxu1 }
 0x30c   :  { %v368_v29 = vmul.f32 0.044715, %v356_v25  ;;  %v360_v30 = vadd.f32 %v359_v28, %v234_v22  ;;  %v361_v31 = vpop.f32.mrb[3].mxu1  ;;  %v364_v58 = vmul.f32 0.5, %v356_v25 }
 0x30d   :  { %v369_v32 = vmul.f32 0.044715, %v358_v27  ;;  %v362_v33 = vadd.f32 %v361_v31, %v238_v23  ;;  %v365_v61 = vmul.f32 0.5, %v358_v27 }
 0x30e   :  { %v372_v34 = vmul.f32 %v368_v29, %v356_v25  ;;  %v370_v35 = vmul.f32 0.044715, %v360_v30  ;;  %v366_v59 = vmul.f32 0.5, %v360_v30 }
 0x30f   :  { %v373_v36 = vmul.f32 %v369_v32, %v358_v27  ;;  %v371_v37 = vmul.f32 0.044715, %v362_v33  ;;  %v367_v62 = vmul.f32 0.5, %v362_v33 }
 0x310   :  { %v376_v38 = vmul.f32 %v372_v34, %v356_v25  ;;  %v374_v39 = vmul.f32 %v370_v35, %v360_v30 }
 0x311   :  { %v377_v40 = vmul.f32 %v373_v36, %v358_v27  ;;  %v375_v41 = vmul.f32 %v371_v37, %v362_v33 }
 0x312   :  { %v380_v42 = vadd.f32 %v376_v38, %v356_v25  ;;  %v378_v43 = vmul.f32 %v374_v39, %v360_v30 }
 0x313   :  { %v379_v44 = vmul.f32 %v375_v41, %v362_v33  ;;  %v381_v45 = vadd.f32 %v377_v40, %v358_v27 }
 0x314   :  { %v384_v46 = vmul.f32 0.7978846, %v380_v42  ;;  %v382_v47 = vadd.f32 %v378_v43, %v360_v30 }
 0x315   :  { %v383_v48 = vadd.f32 %v379_v44, %v362_v33  ;;  %v385_v49 = vmul.f32 0.7978846, %v381_v45 }
 0x316   :  { %768 = vtanh.f32 %v384_v46  ;;  %v386_v50 = vmul.f32 0.7978846, %v382_v47 }
 0x317   :  { %v387_v51 = vmul.f32 0.7978846, %v383_v48  ;;  %770 = vtanh.f32 %v385_v49 }
 0x318   :  { %772 = vtanh.f32 %v386_v50 }
 0x319   :  { %774 = vtanh.f32 %v387_v51 }
 0x320   :  { %v769_v52 = vpop.eup %768 }
 0x321   :  { %v771_v53 = vpop.eup %770  ;;  %v392_v54 = vadd.f32 1.0, %v769_v52 }
 0x322   :  { %v773_v55 = vpop.eup %772  ;;  %v393_v56 = vadd.f32 1.0, %v771_v53 }
 0x323   :  { %v775_v57 = vpop.eup %774  ;;  %v394_v60 = vadd.f32 1.0, %v773_v55  ;;  %v396_v0 = vmul.f32 %v392_v54, %v364_v58 }
 0x324   :  { %v395_v63 = vadd.f32 1.0, %v775_v57  ;;  %v397_v2 = vmul.f32 %v393_v56, %v365_v61 }
 0x325   :  { %v398_v1 = vmul.f32 %v394_v60, %v366_v59 }
 0x326   :  { %v399_v3 = vmul.f32 %v395_v63, %v367_v62 }
 0x327   :  { %v402_v4 = vpack.c.bf16 %v398_v1, %v396_v0 }
 0x328   :  { %v403_v5 = vpack.c.bf16 %v399_v3, %v397_v2 }
 0x32a   :  { %564 = vmatprep.mubr.bf16.mxu0 %v403_v5 }
 0x32b   :  { %565 = vmatmul.mubr.bf16.vlgmr.msra.gmra.mrb[4].mxu0 %v402_v4 }
 0x3fe   :  { %v683_v6 = vpop.f32.mrb[4].mxu0 }
 0x3ff   :  { %v684_v7 = vpop.f32.mrb[5].mxu0 }
 0x400   :  { %v685_v9 = vadd.f32 %v684_v7, %v683_v6  ;;  %v686_v10 = vpop.f32.mrb[6].mxu0 }
 0x401   :  { %v687_v11 = vpop.f32.mrb[7].mxu0 }
 0x402   :  { %v589_v12 = vadd.f32 %v685_v9, %v657_v8  ;;  %v688_v13 = vadd.f32 %v687_v11, %v686_v10 }
 0x404   :  { %v593_v14 = vadd.f32 %v589_v12, %v894_v16  ;;  %v590_v15 = vadd.f32 %v688_v13, %v657_v8 }
 0x406   :  { %595 = vst [vmem:[#allocation5] sm:$0xff] %v593_v14  ;;  %v594_v17 = vadd.f32 %v590_v15, %v900_v20 }
 0x408   :  { %596 = vst [vmem:[#allocation5 + $0x8] sm:$0xff] %v594_v17 }
 0x409   :  { %787 = shalt.err (!%p784_p4)
}
 0x40a   :  { %s788_s13 = scalar_lea.hbm %s1037_s10, 256 }
 0x40b   :  { %p789_p5 = scmp.ne.s32.totalorder %s1037_s10, %s788_s13  ;;  %p792_p6 = scmp.lt.u32.totalorder %s788_s13, %s1037_s10 }
 0x40d   :  { %p794_p7 = pnand %p792_p6, %p789_p5 }
 0x40f   :  { %797 = shalt.err (!%p794_p7)
}
 0x410   :  { %s804_s15 = smov 128   ;;  %s805_s16 = smov 8  }
 0x411   :  { %608 = dma.vmem_to_hbm [thread:$0]  %s603_s30, 256, %s1037_s10, [#allocation6], %s804_s15, %s804_s15, %s805_s16  }
 0x412   :  { %798 = dma.done.wait [#allocation6], 256  }
 0x413   :  { %799 = vsyncadd [#allocation6], 4294967040 }
 0x414   :  { %612 = vsyncpa [#allocation6], 1 }

// kernel: transformer_forward.8
= control target key start
LH: loop header
LB: loop body
LE: loop exit
PB: predicated region body
PF: predicated region fallthrough
CT: control target
= control target key end

     0   :  { %v760_v0 = vmov 0.0   ;;  %vm761_vm0 = vmmov 0   ;;  %v762_v40 = vmov 0   ;;  %s978_s1 = inlined_call_operand.vmem [shape: bf16[128,128], index: 1, kind: input, shape index: {}]   ;;  %s979_s0 = inlined_call_operand.vmem [shape: bf16[16,128], index: 0, kind: input, shape index: {}]   ;;  %s980_s2 = inlined_call_operand.vmem [shape: f32[1,128], index: 2, kind: input, shape index: {}]   ;;  %s981_s3 = inlined_call_operand.vmem [shape: f32[16,128], index: 3, kind: input, shape index: {}]   ;;  %s982_s6 = inlined_call_operand.vmem [shape: bf16[128,256], index: 6, kind: input, shape index: {}]   ;;  %s983_s4 = inlined_call_operand.vmem [shape: f32[1,128], index: 4, kind: input, shape index: {}]   ;;  %s984_s5 = inlined_call_operand.vmem [shape: f32[1,128], index: 5, kind: input, shape index: {}]   ;;  %s985_s8 = inlined_call_operand.vmem [shape: bf16[256,128], index: 8, kind: input, shape index: {}]   ;;  %s986_s7 = inlined_call_operand.vmem [shape: f32[1,256], index: 7, kind: input, shape index: {}]   ;;  %s987_s9 = inlined_call_operand.vmem [shape: f32[1,128], index: 9, kind: input, shape index: {}]   ;;  %s988_s10 = inlined_call_operand.vmem [shape: f32[16,128], index: 10, kind: output, shape index: {}]  }
   0x1   :  { %676 = vmatprep.subr.bf16.mxu0 %v760_v0  ;;  %v699_v1 = vld [vmem:[%s978_s1] sm:$0xff]   ;;  %692 = vmatprep.mubr.msk.bf16.mxu0 %vm761_vm0, %v760_v0  ;;  %v700_v2 = vld [vmem:[%s978_s1 + $0x8] sm:$0xff]   ;;  %v701_v3 = vld [vmem:[%s978_s1 + $0x10] sm:$0xff]  }
   0x2   :  { %677 = vmatpush3.bf16.msra.mxu0 %v699_v1  ;;  %v702_v4 = vld [vmem:[%s978_s1 + $0x18] sm:$0xff]   ;;  %v703_v5 = vld [vmem:[%s978_s1 + $0x20] sm:$0xff]   ;;  %v704_v6 = vld [vmem:[%s978_s1 + $0x28] sm:$0xff]   ;;  %352 = vmatprep.mubr.bf16.mxu1 %v762_v40 }
   0x3   :  { %678 = vmatprep.subr.bf16.mxu0 %v760_v0  ;;  %v705_v7 = vld [vmem:[%s978_s1 + $0x30] sm:$0xff]   ;;  %v706_v8 = vld [vmem:[%s978_s1 + $0x38] sm:$0xff]   ;;  %v707_v9 = vld [vmem:[%s979_s0] sm:$0xff]  }
   0x4   :  { %v600_v10 = vld [vmem:[%s980_s2] ss:$0 sm:$0xff]  ;;  %v161_v19 = vld [vmem:[%s981_s3 + $0x8] sm:$0xff]  ;;  %v711_v23 = vld [vmem:[%s982_s6 + $0x14] ss:$8 sps:$4 sm:$0xff]  }
   0x5   :  { %v160_v12 = vld [vmem:[%s981_s3] sm:$0xff]  ;;  %v713_v32 = vld [vmem:[%s982_s6 + $0x10] ss:$8 sps:$4 sm:$0xff]   ;;  %v717_v35 = vld [vmem:[%s982_s6 + $0x34] ss:$8 sps:$4 sm:$0xff]  }
   0x6   :  { %679 = vmatpush3.bf16.msra.mxu0 %v700_v2  ;;  %v708_v21 = vld [vmem:[%s982_s6 + $0x4] ss:$8 sps:$4 sm:$0xff]   ;;  %v710_v22 = vld [vmem:[%s982_s6] ss:$8 sps:$4 sm:$0xff]   ;;  %v719_v36 = vld [vmem:[%s982_s6 + $0x30] ss:$8 sps:$4 sm:$0xff]  }
   0x7   :  { %680 = vmatprep.subr.bf16.mxu0 %v760_v0  ;;  %320 = vmatprep.subr.bf16.mxu1 %v708_v21  ;;  %v714_v33 = vld [vmem:[%s982_s6 + $0x24] ss:$8 sps:$4 sm:$0xff]   ;;  %v716_v34 = vld [vmem:[%s982_s6 + $0x20] ss:$8 sps:$4 sm:$0xff]   ;;  %v723_v39 = vld [vmem:[%s982_s6 + $0x54] ss:$8 sps:$4 sm:$0xff]  }
   0x8   :  { %321 = vmatpush1.bf16.msra.mxu1 %v710_v22  ;;  %v720_v37 = vld [vmem:[%s982_s6 + $0x44] ss:$8 sps:$4 sm:$0xff]   ;;  %v722_v38 = vld [vmem:[%s982_s6 + $0x40] ss:$8 sps:$4 sm:$0xff]   ;;  %v725_v41 = vld [vmem:[%s982_s6 + $0x50] ss:$8 sps:$4 sm:$0xff]  }
   0x9   :  { %322 = vmatprep.subr.bf16.mxu1 %v711_v23  ;;  %v726_v42 = vld [vmem:[%s982_s6 + $0x64] ss:$8 sps:$4 sm:$0xff]   ;;  %v728_v43 = vld [vmem:[%s982_s6 + $0x60] ss:$8 sps:$4 sm:$0xff]   ;;  %v729_v44 = vld [vmem:[%s982_s6 + $0x74] ss:$8 sps:$4 sm:$0xff]  }
   0xa   :  { %681 = vmatpush3.bf16.msra.mxu0 %v701_v3  ;;  %v731_v45 = vld [vmem:[%s982_s6 + $0x70] ss:$8 sps:$4 sm:$0xff]   ;;  %v610_v54 = vld [vmem:[%s983_s4] ss:$0 sm:$0xff]  ;;  %v734_v1 = vld [vmem:[%s985_s8 + $0x48] sm:$0xff]  }
   0xb   :  { %682 = vmatprep.subr.bf16.mxu0 %v760_v0  ;;  %v611_v58 = vld [vmem:[%s984_s5] ss:$0 sm:$0xff]  ;;  %v735_v2 = vld [vmem:[%s985_s8 + $0x8] sm:$0xff]   ;;  %v736_v3 = vld [vmem:[%s985_s8 + $0x50] sm:$0xff]  }
   0xc   :  { %323 = vmatpush1.bf16.msra.mxu1 %v713_v32  ;;  %v732_v63 = vld [vmem:[%s985_s8 + $0x40] sm:$0xff]  }
   0xd   :  { %324 = vmatprep.subr.bf16.mxu1 %v714_v33 }
   0xe   :  { %683 = vmatpush3.bf16.msra.mxu0 %v702_v4  ;;  %v737_v4 = vld [vmem:[%s985_s8 + $0x10] sm:$0xff]  }
   0xf   :  { %684 = vmatprep.subr.bf16.mxu0 %v760_v0 }
  0x10   :  { %325 = vmatpush1.bf16.msra.mxu1 %v716_v34 }
  0x11   :  { %326 = vmatprep.subr.bf16.mxu1 %v717_v35 }
  0x12   :  { %685 = vmatpush3.bf16.msra.mxu0 %v703_v5  ;;  %v738_v5 = vld [vmem:[%s985_s8 + $0x58] sm:$0xff]  }
  0x13   :  { %686 = vmatprep.subr.bf16.mxu0 %v760_v0 }
  0x14   :  { %327 = vmatpush1.bf16.msra.mxu1 %v719_v36 }
  0x15   :  { %328 = vmatprep.subr.bf16.mxu1 %v720_v37 }
  0x16   :  { %687 = vmatpush3.bf16.msra.mxu0 %v704_v6  ;;  %v739_v6 = vld [vmem:[%s985_s8 + $0x18] sm:$0xff]  }
  0x17   :  { %688 = vmatprep.subr.bf16.mxu0 %v760_v0 }
  0x18   :  { %329 = vmatpush1.bf16.msra.mxu1 %v722_v38 }
  0x19   :  { %330 = vmatprep.subr.bf16.mxu1 %v723_v39 }
  0x1a   :  { %689 = vmatpush3.bf16.msra.mxu0 %v705_v7  ;;  %v740_v7 = vld [vmem:[%s985_s8 + $0x60] sm:$0xff]  }
  0x1b   :  { %690 = vmatprep.subr.bf16.mxu0 %v760_v0  ;;  %v733_v0 = vld [vmem:[%s985_s8] sm:$0xff]  }
  0x1c   :  { %331 = vmatpush1.bf16.msra.mxu1 %v725_v41 }
  0x1d   :  { %332 = vmatprep.subr.bf16.mxu1 %v726_v42 }
  0x1e   :  { %691 = vmatpush3.bf16.msra.mxu0 %v706_v8  ;;  %v741_v8 = vld [vmem:[%s985_s8 + $0x20] sm:$0xff]  }
  0x1f   :  { %654 = vmatprep.subr.bf16.mxu0 %v732_v63 }
  0x20   :  { %333 = vmatpush1.bf16.msra.mxu1 %v728_v43 }
  0x21   :  { %693 = vmatmul.mubr.bf16.vlgmr.msra.gmra.mrb[0].mxu0 %v707_v9  ;;  %334 = vmatprep.subr.bf16.mxu1 %v729_v44  ;;  %v742_v9 = vld [vmem:[%s985_s8 + $0x68] sm:$0xff]  }
  0x22   :  { %655 = vmatpush3.bf16.msra.mxu0 %v733_v0 }
  0x23   :  { %656 = vmatprep.subr.bf16.mxu0 %v734_v1 }
  0x24   :  { %335 = vmatpush1.bf16.msra.mxu1 %v731_v45 }
  0x26   :  { %657 = vmatpush3.bf16.msra.mxu0 %v735_v2 }
  0x27   :  { %658 = vmatprep.subr.bf16.mxu0 %v736_v3 }
  0x2a   :  { %659 = vmatpush3.bf16.msra.mxu0 %v737_v4 }
  0x2b   :  { %660 = vmatprep.subr.bf16.mxu0 %v738_v5 }
  0x2e   :  { %661 = vmatpush3.bf16.msra.mxu0 %v739_v6 }
  0x2f   :  { %662 = vmatprep.subr.bf16.mxu0 %v740_v7 }
  0x32   :  { %663 = vmatpush3.bf16.msra.mxu0 %v741_v8  ;;  %v644_v8 = vld [vmem:[%s987_s9] ss:$0 sm:$0xff] }
  0x33   :  { %664 = vmatprep.subr.bf16.mxu0 %v742_v9 }
  0xf4   :  { %v153_v11 = vpop.f32.mrb[0].mxu0 }
  0xf5   :  { %v154_v13 = vadd.f32 %v600_v10, %v153_v11  ;;  %v694_v14 = vpop.f32.mrb[1].mxu0  ;;  %v744_v11 = vld [vmem:[%s985_s8 + $0x70] sm:$0xff]  }
  0xf6   :  { %v156_v15 = vpop.f32.mrb[2].mxu0  ;;  %v747_v14 = vld [vmem:[%s985_s8 + $0x38] sm:$0xff]  }
  0xf7   :  { %v851_v16 = vadd.f32 %v160_v12, %v154_v13  ;;  %v157_v17 = vadd.f32 %v600_v10, %v156_v15  ;;  %v695_v18 = vpop.f32.mrb[3].mxu0  ;;  %v743_v10 = vld [vmem:[%s985_s8 + $0x28] sm:$0xff]   ;;  %v745_v12 = vld [vmem:[%s985_s8 + $0x30] sm:$0xff]   ;;  %v746_v13 = vld [vmem:[%s985_s8 + $0x78] sm:$0xff]   ;;  %v230_v15 = vlaneseq }
  0xf8   :  { %665 = vmatpush3.bf16.msra.mxu0 %v743_v10 }
  0xf9   :  { %168 = vadd.xlane.f32.xlu0 %v851_v16  ;;  %v857_v20 = vadd.f32 %v161_v19, %v157_v17  ;;  %666 = vmatprep.subr.bf16.mxu0 %v744_v11  ;;  %v231_v17 = vshrl.u32 %v230_v15, 7  ;;  %v228_v19 = vld [vmem:[%s986_s7] sm:$0x3] }
  0xfb   :  { %v232_v18 = vsub.s32 0, %v231_v17  ;;  %v236_v21 = vsub.s32 1, %v231_v17 }
  0xfc   :  { %667 = vmatpush3.bf16.msra.mxu0 %v745_v12 }
  0xfd   :  { %170 = vadd.xlane.f32.xlu0 %v857_v20  ;;  %668 = vmatprep.subr.bf16.mxu0 %v746_v13  ;;  %v233_v22 = vrot.slane %v228_v19, %v232_v18  ;;  %v237_v23 = vrot.slane %v228_v19, %v236_v21 }
 0x100   :  { %669 = vmatpush3.bf16.msra.mxu0 %v747_v14 }
 0x186   :  { %v169_v24 = vpop.xlane.xlu0 %168 }
 0x187   :  { %v173_v25 = vmul.f32 0.0078125, %v169_v24 }
 0x189   :  { %v175_v26 = vsub.f32 %v851_v16, %v173_v25 }
 0x18a   :  { %v171_v27 = vpop.xlane.xlu0 %170 }
 0x18b   :  { %v174_v28 = vmul.f32 0.0078125, %v171_v27  ;;  %v177_v29 = vmul.f32 %v175_v26, %v175_v26 }
 0x18d   :  { %v176_v30 = vsub.f32 %v857_v20, %v174_v28  ;;  %179 = vadd.xlane.f32.xlu1 %v177_v29 }
 0x18f   :  { %v178_v31 = vmul.f32 %v176_v30, %v176_v30 }
 0x191   :  { %181 = vadd.xlane.f32.xlu1 %v178_v31 }
 0x21a   :  { %v180_v46 = vpop.xlane.xlu1 %179 }
 0x21b   :  { %v183_v47 = vmul.f32 0.0078125, %v180_v46 }
 0x21d   :  { %v185_v48 = vadd.f32 1e-05, %v183_v47 }
 0x21e   :  { %v182_v49 = vpop.xlane.xlu1 %181 }
 0x21f   :  { %748 = vrsqrt.f32 %v185_v48  ;;  %v184_v50 = vmul.f32 0.0078125, %v182_v49 }
 0x221   :  { %v186_v51 = vadd.f32 1e-05, %v184_v50 }
 0x223   :  { %750 = vrsqrt.f32 %v186_v51 }
 0x229   :  { %v749_v52 = vpop.eup %748 }
 0x22a   :  { %v189_v53 = vmul.f32 %v749_v52, %v175_v26 }
 0x22c   :  { %v197_v57 = vmul.f32 %v610_v54, %v189_v53 }
 0x22d   :  { %v751_v55 = vpop.eup %750 }
 0x22e   :  { %v190_v56 = vmul.f32 %v751_v55, %v176_v30  ;;  %v205_v60 = vadd.f32 %v611_v58, %v197_v57 }
 0x230   :  { %v198_v59 = vmul.f32 %v610_v54, %v190_v56 }
 0x232   :  { %v206_v61 = vadd.f32 %v611_v58, %v198_v59 }
 0x234   :  { %v207_v62 = vpack.c.bf16 %v206_v61, %v205_v60 }
 0x236   :  { %353 = vmatmul.mubr.bf16.vlgmr.msra.gmra.mrb[0].mxu1 %v207_v62 }
 0x309   :  { %v354_v24 = vpop.f32.mrb[0].mxu1 }
 0x30a   :  { %v355_v25 = vadd.f32 %v354_v24, %v233_v22  ;;  %v356_v26 = vpop.f32.mrb[1].mxu1 }
 0x30b   :  { %v357_v27 = vadd.f32 %v356_v26, %v237_v23  ;;  %v358_v28 = vpop.f32.mrb[2].mxu1 }
 0x30c   :  { %v367_v29 = vmul.f32 0.044715, %v355_v25  ;;  %v359_v30 = vadd.f32 %v358_v28, %v233_v22  ;;  %v360_v31 = vpop.f32.mrb[3].mxu1  ;;  %v363_v58 = vmul.f32 0.5, %v355_v25 }
 0x30d   :  { %v368_v32 = vmul.f32 0.044715, %v357_v27  ;;  %v361_v33 = vadd.f32 %v360_v31, %v237_v23  ;;  %v364_v61 = vmul.f32 0.5, %v357_v27 }
 0x30e   :  { %v371_v34 = vmul.f32 %v367_v29, %v355_v25  ;;  %v369_v35 = vmul.f32 0.044715, %v359_v30  ;;  %v365_v59 = vmul.f32 0.5, %v359_v30 }
 0x30f   :  { %v372_v36 = vmul.f32 %v368_v32, %v357_v27  ;;  %v370_v37 = vmul.f32 0.044715, %v361_v33  ;;  %v366_v62 = vmul.f32 0.5, %v361_v33 }
 0x310   :  { %v375_v38 = vmul.f32 %v371_v34, %v355_v25  ;;  %v373_v39 = vmul.f32 %v369_v35, %v359_v30 }
 0x311   :  { %v376_v40 = vmul.f32 %v372_v36, %v357_v27  ;;  %v374_v41 = vmul.f32 %v370_v37, %v361_v33 }
 0x312   :  { %v379_v42 = vadd.f32 %v375_v38, %v355_v25  ;;  %v377_v43 = vmul.f32 %v373_v39, %v359_v30 }
 0x313   :  { %v378_v44 = vmul.f32 %v374_v41, %v361_v33  ;;  %v380_v45 = vadd.f32 %v376_v40, %v357_v27 }
 0x314   :  { %v383_v46 = vmul.f32 0.7978846, %v379_v42  ;;  %v381_v47 = vadd.f32 %v377_v43, %v359_v30 }
 0x315   :  { %v382_v48 = vadd.f32 %v378_v44, %v361_v33  ;;  %v384_v49 = vmul.f32 0.7978846, %v380_v45 }
 0x316   :  { %752 = vtanh.f32 %v383_v46  ;;  %v385_v50 = vmul.f32 0.7978846, %v381_v47 }
 0x317   :  { %v386_v51 = vmul.f32 0.7978846, %v382_v48  ;;  %754 = vtanh.f32 %v384_v49 }
 0x318   :  { %756 = vtanh.f32 %v385_v50 }
 0x319   :  { %758 = vtanh.f32 %v386_v51 }
 0x320   :  { %v753_v52 = vpop.eup %752 }
 0x321   :  { %v755_v53 = vpop.eup %754  ;;  %v391_v54 = vadd.f32 1.0, %v753_v52 }
 0x322   :  { %v757_v55 = vpop.eup %756  ;;  %v392_v56 = vadd.f32 1.0, %v755_v53 }
 0x323   :  { %v759_v57 = vpop.eup %758  ;;  %v393_v60 = vadd.f32 1.0, %v757_v55  ;;  %v395_v0 = vmul.f32 %v391_v54, %v363_v58 }
 0x324   :  { %v394_v63 = vadd.f32 1.0, %v759_v57  ;;  %v396_v2 = vmul.f32 %v392_v56, %v364_v61 }
 0x325   :  { %v397_v1 = vmul.f32 %v393_v60, %v365_v59 }
 0x326   :  { %v398_v3 = vmul.f32 %v394_v63, %v366_v62 }
 0x327   :  { %v401_v4 = vpack.c.bf16 %v397_v1, %v395_v0 }
 0x328   :  { %v402_v5 = vpack.c.bf16 %v398_v3, %v396_v2 }
 0x32a   :  { %563 = vmatprep.mubr.bf16.mxu0 %v402_v5 }
 0x32b   :  { %564 = vmatmul.mubr.bf16.vlgmr.msra.gmra.mrb[4].mxu0 %v401_v4 }
 0x3fe   :  { %v670_v6 = vpop.f32.mrb[4].mxu0 }
 0x3ff   :  { %v671_v7 = vpop.f32.mrb[5].mxu0 }
 0x400   :  { %v672_v9 = vadd.f32 %v671_v7, %v670_v6  ;;  %v673_v10 = vpop.f32.mrb[6].mxu0 }
 0x401   :  { %v674_v11 = vpop.f32.mrb[7].mxu0 }
 0x402   :  { %v588_v12 = vadd.f32 %v672_v9, %v644_v8  ;;  %v675_v13 = vadd.f32 %v674_v11, %v673_v10 }
 0x404   :  { %v592_v14 = vadd.f32 %v588_v12, %v851_v16  ;;  %v589_v15 = vadd.f32 %v675_v13, %v644_v8 }
 0x406   :  { %594 = vst [vmem:[%s988_s10] sm:$0xff] %v592_v14  ;;  %v593_v17 = vadd.f32 %v589_v15, %v857_v20 }
 0x408   :  { %595 = vst [vmem:[%s988_s10 + $0x8] sm:$0xff] %v593_v17 }

</bundles_post_ra>
